<compile_context>
chip_gen: v5e
topology: v5e:2x2
jax: 0.10.0
libtpu: 0.0.40
codegen_flags: <defaults>
</compile_context>

<pallas_src>
import jax
import jax.numpy as jnp
import numpy as np
from jax.experimental import pallas as pl
from jax.experimental.pallas import tpu as pltpu

VMEM_SPEC = pl.BlockSpec(memory_space=pltpu.MemorySpace.VMEM)

NODE_TYPES = ['drug', 'disorder', 'protein', 'gene', 'pathway', 'signature',
              'tissue', 'side_effect', 'phenotype', 'go']

# Synthetic hetero-graph metadata (edge types present in `data`).  Only drug /
# disorder / protein participate in message passing / classification; the other
# 7 per-type Linear(768,H) projections exist in the module but cannot affect
# `pred`, so the kernel skips them.
MP_TYPES = ['drug', 'disorder', 'protein']
N_MP = len(MP_TYPES)
EDGE_TYPES = [
    ('drug', 'DrugHasIndication', 'disorder'),
    ('disorder', 'rev_DrugHasIndication', 'drug'),
    ('drug', 'DrugHasTarget', 'protein'),
    ('protein', 'rev_DrugHasTarget', 'drug'),
    ('protein', 'ProteinAssociatedWithDisorder', 'disorder'),
    ('disorder', 'rev_ProteinAssociatedWithDisorder', 'protein'),
]
_MP_IDX = {'drug': 0, 'disorder': 1, 'protein': 2}
ET_LOCAL = [(_MP_IDX[s], _MP_IDX[d]) for (s, _, d) in EDGE_TYPES]
# per destination-type slot: list of (edge_type_index, source_type slot)
INCOMING = [[(e, s) for e, (s, d) in enumerate(ET_LOCAL) if d == dd]
            for dd in range(N_MP)]

FEAT_IN = 768      # text-embedding input dim (fixed in the module)
HIDDEN = 32        # hidden_channels
GNN_OUT = 64       # conv3 output size (fixed in the module)
HP = 64            # uniform padded hidden width inside the kernel (exact zeros)
N_LAYERS = 3


# ------------------------------ fused kernel ------------------------------- #

def _fused_kernel(x3_ref, wp_ref, bp_ref, adj_ref, wl_ref, wrs_ref, bls_ref,
                  eli_ref, o_ref):
    # x3  : [3, N, 768]  bf16  raw drug/disorder/protein features (row padded)
    # wp  : [3, 768, 64] bf16  per-type projection weights (cols >=32 are zero)
    # bp  : [3, 1, 64]   f32   per-type projection bias (zero padded)
    # adj : [6, N, N]    f32   normalized (mean) adjacency per edge type [dst,src]
    # wl  : [3, 6, 64, 64] bf16  SAGEConv lin_l weights (true 32xfo, zero padded)
    # wrs : [3, 3, 64, 64] bf16  lin_r pre-summed over edge types per dst type
    # bls : [3, 3, 1, 64]  f32   lin_l bias pre-summed over edge types per dst
    # eli : [2, E, 1]    int32  edge_label_index (drug row / disorder row)
    # o   : [E, 1]       f32

    # 1) per-node-type input projection: bf16 MXU inputs, f32 accum + bias.
    x = [jnp.dot(x3_ref[t], wp_ref[t], preferred_element_type=jnp.float32)
         + bp_ref[t]
         for t in range(N_MP)]

    # 2) 3-layer hetero SAGE GNN.  PyG SAGEConv (mean aggr, root_weight=True):
    #      out_e = lin_l(mean_agg(x_src)) + lin_r(x_dst)
    #    to_hetero 'sum':  new_x[dst] = sum_{e -> dst} out_e
    #    (lin_r weights / lin_l biases pre-summed per dst at pack time).
    for layer in range(N_LAYERS):
        new_x = []
        for d in range(N_MP):
            acc = (jnp.dot(x[d], wrs_ref[layer, d].astype(jnp.float32),
                           preferred_element_type=jnp.float32)
                   + bls_ref[layer, d])
            for (e, s) in INCOMING[d]:
                agg = jnp.dot(adj_ref[e], x[s],
                              preferred_element_type=jnp.float32)
                acc = acc + jnp.dot(agg, wl_ref[layer, e].astype(jnp.float32),
                                    preferred_element_type=jnp.float32)
            new_x.append(acc)
        if layer < N_LAYERS - 1:                 # ReLU after layers 1 and 2
            new_x = [jnp.maximum(v, 0.0) for v in new_x]
        x = new_x

    # 3) classifier: build one-hot row selectors in-kernel from the int32
    #    indices (TPU-idiomatic gather for tiny row counts), then dot-reduce.
    n = x[0].shape[0]
    e_lbl = eli_ref.shape[1]
    iota = jax.lax.broadcasted_iota(jnp.int32, (e_lbl, n), 1)
    sel_drug = (iota == eli_ref[0]).astype(jnp.float32)      # [E, N]
    sel_dis = (iota == eli_ref[1]).astype(jnp.float32)       # [E, N]
    u = jnp.dot(sel_drug, x[0], preferred_element_type=jnp.float32)
    v = jnp.dot(sel_dis, x[1], preferred_element_type=jnp.float32)
    o_ref[...] = jnp.sum(u * v, axis=-1, keepdims=True)


@jax.jit
def model_forward(x3, wp, bp, adj, wl, wrs, bls, eli):
    """Whole Model.forward in one pallas_call; all intermediates stay in VMEM."""
    e_lbl = eli.shape[1]
    out = pl.pallas_call(
        _fused_kernel,
        out_shape=jax.ShapeDtypeStruct((e_lbl, 1), jnp.float32),
        in_specs=[VMEM_SPEC] * 8,
        out_specs=VMEM_SPEC,
    )(x3, wp, bp, adj, wl, wrs, bls, eli)
    return out[:, 0]


# ------------------- pure-JAX f32 reference (unpadded) --------------------- #

def ref_forward(x_dict_raw, adj_dict, edge_label_index, lin_params, sage_params):
    # Mirrors Model.forward: all 10 projections, hetero GNN, classifier.
    x = {nt: x_dict_raw[nt] @ lin_params[nt][0] + lin_params[nt][1]
         for nt in NODE_TYPES}
    for layer in range(N_LAYERS):
        new_x = {}
        for et in EDGE_TYPES:
            src, _, dst = et
            w_l, b_l, w_r = sage_params[layer][et]
            out = (adj_dict[et] @ x[src]) @ w_l + b_l + x[dst] @ w_r
            new_x[dst] = out if dst not in new_x else new_x[dst] + out
        if layer < N_LAYERS - 1:
            new_x = {k: jnp.maximum(v, 0.0) for k, v in new_x.items()}
        x = new_x
    u = x['drug'][edge_label_index[0]]
    v = x['disorder'][edge_label_index[1]]
    return (u * v).sum(axis=-1)


# ------------------------------- setup glue -------------------------------- #

def init_linear(key, fan_in, fan_out):
    kw, kb = jax.random.split(key)
    bound = 1.0 / float(np.sqrt(fan_in))
    w = jax.random.uniform(kw, (fan_in, fan_out), jnp.float32, -bound, bound)
    b = jax.random.uniform(kb, (fan_out,), jnp.float32, -bound, bound)
    return w, b


def init_sage(key, fan_in, fan_out):
    k1, k2 = jax.random.split(key)
    w_l, b_l = init_linear(k1, fan_in, fan_out)
    w_r, _ = init_linear(k2, fan_in, fan_out)   # lin_r has no bias in PyG SAGEConv
    return w_l, b_l, w_r


def mean_adjacency(edge_index, n_src, n_dst):
    src, dst = edge_index[0], edge_index[1]
    a = jnp.zeros((n_dst, n_src), jnp.float32).at[dst, src].add(1.0)
    deg = a.sum(axis=1, keepdims=True)
    return a / jnp.maximum(deg, 1.0)   # scatter-mean; isolated nodes -> 0


def pack_mp_features(x_dict_raw, n_pad):
    """Stack drug/disorder/protein features, row-padded, bf16 cast on the host."""
    xs = []
    for nt in MP_TYPES:
        x = np.asarray(x_dict_raw[nt], np.float32)
        out = np.zeros((n_pad, x.shape[1]), np.float32)
        out[:x.shape[0]] = x
        xs.append(out)
    return jnp.asarray(np.stack(xs), jnp.bfloat16)           # [3, n_pad, 768]


def pack_proj_params(lin_params):
    ws = np.zeros((N_MP, FEAT_IN, HP), np.float32)
    bs = np.zeros((N_MP, 1, HP), np.float32)
    for t, nt in enumerate(MP_TYPES):
        w, b = lin_params[nt]
        ws[t, :, :w.shape[1]] = np.asarray(w)
        bs[t, 0, :b.shape[0]] = np.asarray(b)
    return jnp.asarray(ws, jnp.bfloat16), jnp.asarray(bs, jnp.float32)


def pack_sage_params(sage_params):
    n_et = len(EDGE_TYPES)
    wl = np.zeros((N_LAYERS, n_et, HP, HP), np.float32)
    wrs = np.zeros((N_LAYERS, N_MP, HP, HP), np.float32)   # lin_r summed per dst
    bls = np.zeros((N_LAYERS, N_MP, 1, HP), np.float32)    # lin_l bias summed per dst
    for l in range(N_LAYERS):
        for e, et in enumerate(EDGE_TYPES):
            w_l, b_l, w_r = sage_params[l][et]
            fi, fo = w_l.shape
            d = ET_LOCAL[e][1]
            wl[l, e, :fi, :fo] = np.asarray(w_l)
            wrs[l, d, :fi, :fo] += np.asarray(w_r)
            bls[l, d, 0, :fo] += np.asarray(b_l)
    return (jnp.asarray(wl, jnp.bfloat16), jnp.asarray(wrs, jnp.bfloat16),
            jnp.asarray(bls, jnp.float32))


def pack_adjacency(adj_dict, n_pad):
    mats = []
    for et in EDGE_TYPES:
        a = np.asarray(adj_dict[et], np.float32)
        m = np.zeros((n_pad, n_pad), np.float32)
        m[:a.shape[0], :a.shape[1]] = a
        mats.append(m)
    return jnp.asarray(np.stack(mats))                        # [6, n_pad, n_pad]


if __name__ == "__main__":
    key = jax.random.PRNGKey(0)

    node_counts = {'drug': 8, 'disorder': 8, 'protein': 8, 'gene': 4,
                   'pathway': 4, 'signature': 4, 'tissue': 4,
                   'side_effect': 4, 'phenotype': 4, 'go': 4}
    n_edges_per_type = 16
    n_label_edges = 8
    n_mp_pad = max(node_counts[nt] for nt in MP_TYPES)   # 8

    # node features (all 10 types, as in the module)
    x_dict_raw = {}
    for nt in NODE_TYPES:
        key, k = jax.random.split(key)
        x_dict_raw[nt] = jax.random.normal(k, (node_counts[nt], FEAT_IN), jnp.float32)

    # message-passing edges -> dense normalized (mean) adjacencies
    adj_dict = {}
    for et in EDGE_TYPES:
        src_t, _, dst_t = et
        key, ks, kd = jax.random.split(key, 3)
        e_src = jax.random.randint(ks, (n_edges_per_type,), 0, node_counts[src_t])
        e_dst = jax.random.randint(kd, (n_edges_per_type,), 0, node_counts[dst_t])
        adj_dict[et] = mean_adjacency(jnp.stack([e_src, e_dst]),
                                      node_counts[src_t], node_counts[dst_t])

    # supervision edges for the classifier
    key, ks, kd = jax.random.split(key, 3)
    edge_label_index = jnp.stack([
        jax.random.randint(ks, (n_label_edges,), 0, node_counts['drug']),
        jax.random.randint(kd, (n_label_edges,), 0, node_counts['disorder']),
    ])

    # parameters: one Linear(768, H) per node type (all 10, as in the module)
    lin_params = {}
    for nt in NODE_TYPES:
        key, k = jax.random.split(key)
        lin_params[nt] = init_linear(k, FEAT_IN, HIDDEN)

    # parameters: to_hetero replicates each SAGEConv per edge type
    layer_dims = [(HIDDEN, HIDDEN), (HIDDEN, HIDDEN), (HIDDEN, GNN_OUT)]
    sage_params = []
    for (fi, fo) in layer_dims:
        per_et = {}
        for et in EDGE_TYPES:
            key, k = jax.random.split(key)
            per_et[et] = init_sage(k, fi, fo)
        sage_params.append(per_et)

    # pack into the layouts the fused kernel consumes (host-side, outside jit)
    x3 = pack_mp_features(x_dict_raw, n_mp_pad)        # [3, 8, 768] bf16
    adj_stack = pack_adjacency(adj_dict, n_mp_pad)     # [6, 8, 8]   f32
    wp, bp = pack_proj_params(lin_params)              # [3,768,64] bf16, [3,1,64] f32
    wl, wrs, bls = pack_sage_params(sage_params)       # bf16/bf16/f32
    eli = edge_label_index.astype(jnp.int32)[:, :, None]   # [2, E, 1] int32

    pred = model_forward(x3, wp, bp, adj_stack, wl, wrs, bls, eli)
    pred = jax.block_until_ready(pred)

    ref = ref_forward(x_dict_raw, adj_dict, edge_label_index, lin_params, sage_params)
    np.testing.assert_allclose(np.asarray(pred), np.asarray(ref), rtol=5e-2, atol=5e-2)

    assert pred.shape == (n_label_edges,)
    print("KERNEL_OK")
</pallas_src>

<mosaic_0001>
module attributes {stable_mosaic.version = 11 : i64} {
  func.func @_fused_kernel(%arg0: memref<3x8x768xbf16, #tpu.memory_space<vmem>>, %arg1: memref<3x768x64xbf16, #tpu.memory_space<vmem>>, %arg2: memref<3x1x64xf32, #tpu.memory_space<vmem>>, %arg3: memref<6x8x8xf32, #tpu.memory_space<vmem>>, %arg4: memref<3x6x64x64xbf16, #tpu.memory_space<vmem>>, %arg5: memref<3x3x64x64xbf16, #tpu.memory_space<vmem>>, %arg6: memref<3x3x1x64xf32, #tpu.memory_space<vmem>>, %arg7: memref<2x8x1xi32, #tpu.memory_space<vmem>>, %arg8: memref<8x1xf32, #tpu.memory_space<vmem>>) attributes {dimension_semantics = [], scalar_prefetch = 0 : i64, scratch_operands = 0 : i64, tpu.core_type = #tpu.core_type<tc>} {
    %c0 = arith.constant 0 : index
    %c0_0 = arith.constant 0 : index
    %c0_1 = arith.constant 0 : index
    %0 = vector.load %arg0[%c0, %c0_0, %c0_1] : memref<3x8x768xbf16, #tpu.memory_space<vmem>>, vector<1x8x768xbf16>
    %1 = vector.shape_cast %0 : vector<1x8x768xbf16> to vector<8x768xbf16>
    %c0_2 = arith.constant 0 : index
    %c0_3 = arith.constant 0 : index
    %c0_4 = arith.constant 0 : index
    %2 = vector.load %arg1[%c0_2, %c0_3, %c0_4] : memref<3x768x64xbf16, #tpu.memory_space<vmem>>, vector<1x768x64xbf16>
    %3 = vector.shape_cast %2 : vector<1x768x64xbf16> to vector<768x64xbf16>
    %cst = arith.constant dense<0.000000e+00> : vector<8x64xf32>
    %4 = tpu.matmul %1, %3, %cst {dimension_numbers = #tpu.dot_dimension_numbers<[1], [0], [0], [1], [0, 0, 1, 1], [], []>} : vector<8x768xbf16>, vector<768x64xbf16>, vector<8x64xf32> -> vector<8x64xf32>
    %c0_5 = arith.constant 0 : index
    %c0_6 = arith.constant 0 : index
    %c0_7 = arith.constant 0 : index
    %5 = vector.load %arg2[%c0_5, %c0_6, %c0_7] : memref<3x1x64xf32, #tpu.memory_space<vmem>>, vector<1x1x64xf32>
    %6 = vector.shape_cast %5 : vector<1x1x64xf32> to vector<1x64xf32>
    %7 = vector.broadcast %6 : vector<1x64xf32> to vector<8x64xf32>
    %8 = arith.addf %4, %7 : vector<8x64xf32>
    %c1 = arith.constant 1 : index
    %c0_8 = arith.constant 0 : index
    %c0_9 = arith.constant 0 : index
    %9 = vector.load %arg0[%c1, %c0_8, %c0_9] : memref<3x8x768xbf16, #tpu.memory_space<vmem>>, vector<1x8x768xbf16>
    %10 = vector.shape_cast %9 : vector<1x8x768xbf16> to vector<8x768xbf16>
    %c1_10 = arith.constant 1 : index
    %c0_11 = arith.constant 0 : index
    %c0_12 = arith.constant 0 : index
    %11 = vector.load %arg1[%c1_10, %c0_11, %c0_12] : memref<3x768x64xbf16, #tpu.memory_space<vmem>>, vector<1x768x64xbf16>
    %12 = vector.shape_cast %11 : vector<1x768x64xbf16> to vector<768x64xbf16>
    %cst_13 = arith.constant dense<0.000000e+00> : vector<8x64xf32>
    %13 = tpu.matmul %10, %12, %cst_13 {dimension_numbers = #tpu.dot_dimension_numbers<[1], [0], [0], [1], [0, 0, 1, 1], [], []>} : vector<8x768xbf16>, vector<768x64xbf16>, vector<8x64xf32> -> vector<8x64xf32>
    %c1_14 = arith.constant 1 : index
    %c0_15 = arith.constant 0 : index
    %c0_16 = arith.constant 0 : index
    %14 = vector.load %arg2[%c1_14, %c0_15, %c0_16] : memref<3x1x64xf32, #tpu.memory_space<vmem>>, vector<1x1x64xf32>
    %15 = vector.shape_cast %14 : vector<1x1x64xf32> to vector<1x64xf32>
    %16 = vector.broadcast %15 : vector<1x64xf32> to vector<8x64xf32>
    %17 = arith.addf %13, %16 : vector<8x64xf32>
    %c2 = arith.constant 2 : index
    %c0_17 = arith.constant 0 : index
    %c0_18 = arith.constant 0 : index
    %18 = vector.load %arg0[%c2, %c0_17, %c0_18] : memref<3x8x768xbf16, #tpu.memory_space<vmem>>, vector<1x8x768xbf16>
    %19 = vector.shape_cast %18 : vector<1x8x768xbf16> to vector<8x768xbf16>
    %c2_19 = arith.constant 2 : index
    %c0_20 = arith.constant 0 : index
    %c0_21 = arith.constant 0 : index
    %20 = vector.load %arg1[%c2_19, %c0_20, %c0_21] : memref<3x768x64xbf16, #tpu.memory_space<vmem>>, vector<1x768x64xbf16>
    %21 = vector.shape_cast %20 : vector<1x768x64xbf16> to vector<768x64xbf16>
    %cst_22 = arith.constant dense<0.000000e+00> : vector<8x64xf32>
    %22 = tpu.matmul %19, %21, %cst_22 {dimension_numbers = #tpu.dot_dimension_numbers<[1], [0], [0], [1], [0, 0, 1, 1], [], []>} : vector<8x768xbf16>, vector<768x64xbf16>, vector<8x64xf32> -> vector<8x64xf32>
    %c2_23 = arith.constant 2 : index
    %c0_24 = arith.constant 0 : index
    %c0_25 = arith.constant 0 : index
    %23 = vector.load %arg2[%c2_23, %c0_24, %c0_25] : memref<3x1x64xf32, #tpu.memory_space<vmem>>, vector<1x1x64xf32>
    %24 = vector.shape_cast %23 : vector<1x1x64xf32> to vector<1x64xf32>
    %25 = vector.broadcast %24 : vector<1x64xf32> to vector<8x64xf32>
    %26 = arith.addf %22, %25 : vector<8x64xf32>
    %c0_26 = arith.constant 0 : index
    %c0_27 = arith.constant 0 : index
    %c0_28 = arith.constant 0 : index
    %c0_29 = arith.constant 0 : index
    %27 = vector.load %arg5[%c0_26, %c0_27, %c0_28, %c0_29] : memref<3x3x64x64xbf16, #tpu.memory_space<vmem>>, vector<1x1x64x64xbf16>
    %28 = vector.shape_cast %27 : vector<1x1x64x64xbf16> to vector<64x64xbf16>
    %29 = arith.extf %28 : vector<64x64xbf16> to vector<64x64xf32>
    %cst_30 = arith.constant dense<0.000000e+00> : vector<8x64xf32>
    %30 = tpu.matmul %8, %29, %cst_30 {dimension_numbers = #tpu.dot_dimension_numbers<[1], [0], [0], [1], [0, 0, 1, 1], [], []>} : vector<8x64xf32>, vector<64x64xf32>, vector<8x64xf32> -> vector<8x64xf32>
    %c0_31 = arith.constant 0 : index
    %c0_32 = arith.constant 0 : index
    %c0_33 = arith.constant 0 : index
    %c0_34 = arith.constant 0 : index
    %31 = vector.load %arg6[%c0_31, %c0_32, %c0_33, %c0_34] : memref<3x3x1x64xf32, #tpu.memory_space<vmem>>, vector<1x1x1x64xf32>
    %32 = vector.shape_cast %31 : vector<1x1x1x64xf32> to vector<1x64xf32>
    %33 = vector.broadcast %32 : vector<1x64xf32> to vector<8x64xf32>
    %34 = arith.addf %30, %33 : vector<8x64xf32>
    %c1_35 = arith.constant 1 : index
    %c0_36 = arith.constant 0 : index
    %c0_37 = arith.constant 0 : index
    %35 = vector.load %arg3[%c1_35, %c0_36, %c0_37] : memref<6x8x8xf32, #tpu.memory_space<vmem>>, vector<1x8x8xf32>
    %36 = vector.shape_cast %35 : vector<1x8x8xf32> to vector<8x8xf32>
    %cst_38 = arith.constant dense<0.000000e+00> : vector<8x64xf32>
    %37 = tpu.matmul %36, %17, %cst_38 {dimension_numbers = #tpu.dot_dimension_numbers<[1], [0], [0], [1], [0, 0, 1, 1], [], []>} : vector<8x8xf32>, vector<8x64xf32>, vector<8x64xf32> -> vector<8x64xf32>
    %c0_39 = arith.constant 0 : index
    %c1_40 = arith.constant 1 : index
    %c0_41 = arith.constant 0 : index
    %c0_42 = arith.constant 0 : index
    %38 = vector.load %arg4[%c0_39, %c1_40, %c0_41, %c0_42] : memref<3x6x64x64xbf16, #tpu.memory_space<vmem>>, vector<1x1x64x64xbf16>
    %39 = vector.shape_cast %38 : vector<1x1x64x64xbf16> to vector<64x64xbf16>
    %40 = arith.extf %39 : vector<64x64xbf16> to vector<64x64xf32>
    %cst_43 = arith.constant dense<0.000000e+00> : vector<8x64xf32>
    %41 = tpu.matmul %37, %40, %cst_43 {dimension_numbers = #tpu.dot_dimension_numbers<[1], [0], [0], [1], [0, 0, 1, 1], [], []>} : vector<8x64xf32>, vector<64x64xf32>, vector<8x64xf32> -> vector<8x64xf32>
    %42 = arith.addf %34, %41 : vector<8x64xf32>
    %c3 = arith.constant 3 : index
    %c0_44 = arith.constant 0 : index
    %c0_45 = arith.constant 0 : index
    %43 = vector.load %arg3[%c3, %c0_44, %c0_45] : memref<6x8x8xf32, #tpu.memory_space<vmem>>, vector<1x8x8xf32>
    %44 = vector.shape_cast %43 : vector<1x8x8xf32> to vector<8x8xf32>
    %cst_46 = arith.constant dense<0.000000e+00> : vector<8x64xf32>
    %45 = tpu.matmul %44, %26, %cst_46 {dimension_numbers = #tpu.dot_dimension_numbers<[1], [0], [0], [1], [0, 0, 1, 1], [], []>} : vector<8x8xf32>, vector<8x64xf32>, vector<8x64xf32> -> vector<8x64xf32>
    %c0_47 = arith.constant 0 : index
    %c3_48 = arith.constant 3 : index
    %c0_49 = arith.constant 0 : index
    %c0_50 = arith.constant 0 : index
    %46 = vector.load %arg4[%c0_47, %c3_48, %c0_49, %c0_50] : memref<3x6x64x64xbf16, #tpu.memory_space<vmem>>, vector<1x1x64x64xbf16>
    %47 = vector.shape_cast %46 : vector<1x1x64x64xbf16> to vector<64x64xbf16>
    %48 = arith.extf %47 : vector<64x64xbf16> to vector<64x64xf32>
    %cst_51 = arith.constant dense<0.000000e+00> : vector<8x64xf32>
    %49 = tpu.matmul %45, %48, %cst_51 {dimension_numbers = #tpu.dot_dimension_numbers<[1], [0], [0], [1], [0, 0, 1, 1], [], []>} : vector<8x64xf32>, vector<64x64xf32>, vector<8x64xf32> -> vector<8x64xf32>
    %50 = arith.addf %42, %49 : vector<8x64xf32>
    %c0_52 = arith.constant 0 : index
    %c1_53 = arith.constant 1 : index
    %c0_54 = arith.constant 0 : index
    %c0_55 = arith.constant 0 : index
    %51 = vector.load %arg5[%c0_52, %c1_53, %c0_54, %c0_55] : memref<3x3x64x64xbf16, #tpu.memory_space<vmem>>, vector<1x1x64x64xbf16>
    %52 = vector.shape_cast %51 : vector<1x1x64x64xbf16> to vector<64x64xbf16>
    %53 = arith.extf %52 : vector<64x64xbf16> to vector<64x64xf32>
    %cst_56 = arith.constant dense<0.000000e+00> : vector<8x64xf32>
    %54 = tpu.matmul %17, %53, %cst_56 {dimension_numbers = #tpu.dot_dimension_numbers<[1], [0], [0], [1], [0, 0, 1, 1], [], []>} : vector<8x64xf32>, vector<64x64xf32>, vector<8x64xf32> -> vector<8x64xf32>
    %c0_57 = arith.constant 0 : index
    %c1_58 = arith.constant 1 : index
    %c0_59 = arith.constant 0 : index
    %c0_60 = arith.constant 0 : index
    %55 = vector.load %arg6[%c0_57, %c1_58, %c0_59, %c0_60] : memref<3x3x1x64xf32, #tpu.memory_space<vmem>>, vector<1x1x1x64xf32>
    %56 = vector.shape_cast %55 : vector<1x1x1x64xf32> to vector<1x64xf32>
    %57 = vector.broadcast %56 : vector<1x64xf32> to vector<8x64xf32>
    %58 = arith.addf %54, %57 : vector<8x64xf32>
    %c0_61 = arith.constant 0 : index
    %c0_62 = arith.constant 0 : index
    %c0_63 = arith.constant 0 : index
    %59 = vector.load %arg3[%c0_61, %c0_62, %c0_63] : memref<6x8x8xf32, #tpu.memory_space<vmem>>, vector<1x8x8xf32>
    %60 = vector.shape_cast %59 : vector<1x8x8xf32> to vector<8x8xf32>
    %cst_64 = arith.constant dense<0.000000e+00> : vector<8x64xf32>
    %61 = tpu.matmul %60, %8, %cst_64 {dimension_numbers = #tpu.dot_dimension_numbers<[1], [0], [0], [1], [0, 0, 1, 1], [], []>} : vector<8x8xf32>, vector<8x64xf32>, vector<8x64xf32> -> vector<8x64xf32>
    %c0_65 = arith.constant 0 : index
    %c0_66 = arith.constant 0 : index
    %c0_67 = arith.constant 0 : index
    %c0_68 = arith.constant 0 : index
    %62 = vector.load %arg4[%c0_65, %c0_66, %c0_67, %c0_68] : memref<3x6x64x64xbf16, #tpu.memory_space<vmem>>, vector<1x1x64x64xbf16>
    %63 = vector.shape_cast %62 : vector<1x1x64x64xbf16> to vector<64x64xbf16>
    %64 = arith.extf %63 : vector<64x64xbf16> to vector<64x64xf32>
    %cst_69 = arith.constant dense<0.000000e+00> : vector<8x64xf32>
    %65 = tpu.matmul %61, %64, %cst_69 {dimension_numbers = #tpu.dot_dimension_numbers<[1], [0], [0], [1], [0, 0, 1, 1], [], []>} : vector<8x64xf32>, vector<64x64xf32>, vector<8x64xf32> -> vector<8x64xf32>
    %66 = arith.addf %58, %65 : vector<8x64xf32>
    %c4 = arith.constant 4 : index
    %c0_70 = arith.constant 0 : index
    %c0_71 = arith.constant 0 : index
    %67 = vector.load %arg3[%c4, %c0_70, %c0_71] : memref<6x8x8xf32, #tpu.memory_space<vmem>>, vector<1x8x8xf32>
    %68 = vector.shape_cast %67 : vector<1x8x8xf32> to vector<8x8xf32>
    %cst_72 = arith.constant dense<0.000000e+00> : vector<8x64xf32>
    %69 = tpu.matmul %68, %26, %cst_72 {dimension_numbers = #tpu.dot_dimension_numbers<[1], [0], [0], [1], [0, 0, 1, 1], [], []>} : vector<8x8xf32>, vector<8x64xf32>, vector<8x64xf32> -> vector<8x64xf32>
    %c0_73 = arith.constant 0 : index
    %c4_74 = arith.constant 4 : index
    %c0_75 = arith.constant 0 : index
    %c0_76 = arith.constant 0 : index
    %70 = vector.load %arg4[%c0_73, %c4_74, %c0_75, %c0_76] : memref<3x6x64x64xbf16, #tpu.memory_space<vmem>>, vector<1x1x64x64xbf16>
    %71 = vector.shape_cast %70 : vector<1x1x64x64xbf16> to vector<64x64xbf16>
    %72 = arith.extf %71 : vector<64x64xbf16> to vector<64x64xf32>
    %cst_77 = arith.constant dense<0.000000e+00> : vector<8x64xf32>
    %73 = tpu.matmul %69, %72, %cst_77 {dimension_numbers = #tpu.dot_dimension_numbers<[1], [0], [0], [1], [0, 0, 1, 1], [], []>} : vector<8x64xf32>, vector<64x64xf32>, vector<8x64xf32> -> vector<8x64xf32>
    %74 = arith.addf %66, %73 : vector<8x64xf32>
    %c0_78 = arith.constant 0 : index
    %c2_79 = arith.constant 2 : index
    %c0_80 = arith.constant 0 : index
    %c0_81 = arith.constant 0 : index
    %75 = vector.load %arg5[%c0_78, %c2_79, %c0_80, %c0_81] : memref<3x3x64x64xbf16, #tpu.memory_space<vmem>>, vector<1x1x64x64xbf16>
    %76 = vector.shape_cast %75 : vector<1x1x64x64xbf16> to vector<64x64xbf16>
    %77 = arith.extf %76 : vector<64x64xbf16> to vector<64x64xf32>
    %cst_82 = arith.constant dense<0.000000e+00> : vector<8x64xf32>
    %78 = tpu.matmul %26, %77, %cst_82 {dimension_numbers = #tpu.dot_dimension_numbers<[1], [0], [0], [1], [0, 0, 1, 1], [], []>} : vector<8x64xf32>, vector<64x64xf32>, vector<8x64xf32> -> vector<8x64xf32>
    %c0_83 = arith.constant 0 : index
    %c2_84 = arith.constant 2 : index
    %c0_85 = arith.constant 0 : index
    %c0_86 = arith.constant 0 : index
    %79 = vector.load %arg6[%c0_83, %c2_84, %c0_85, %c0_86] : memref<3x3x1x64xf32, #tpu.memory_space<vmem>>, vector<1x1x1x64xf32>
    %80 = vector.shape_cast %79 : vector<1x1x1x64xf32> to vector<1x64xf32>
    %81 = vector.broadcast %80 : vector<1x64xf32> to vector<8x64xf32>
    %82 = arith.addf %78, %81 : vector<8x64xf32>
    %c2_87 = arith.constant 2 : index
    %c0_88 = arith.constant 0 : index
    %c0_89 = arith.constant 0 : index
    %83 = vector.load %arg3[%c2_87, %c0_88, %c0_89] : memref<6x8x8xf32, #tpu.memory_space<vmem>>, vector<1x8x8xf32>
    %84 = vector.shape_cast %83 : vector<1x8x8xf32> to vector<8x8xf32>
    %cst_90 = arith.constant dense<0.000000e+00> : vector<8x64xf32>
    %85 = tpu.matmul %84, %8, %cst_90 {dimension_numbers = #tpu.dot_dimension_numbers<[1], [0], [0], [1], [0, 0, 1, 1], [], []>} : vector<8x8xf32>, vector<8x64xf32>, vector<8x64xf32> -> vector<8x64xf32>
    %c0_91 = arith.constant 0 : index
    %c2_92 = arith.constant 2 : index
    %c0_93 = arith.constant 0 : index
    %c0_94 = arith.constant 0 : index
    %86 = vector.load %arg4[%c0_91, %c2_92, %c0_93, %c0_94] : memref<3x6x64x64xbf16, #tpu.memory_space<vmem>>, vector<1x1x64x64xbf16>
    %87 = vector.shape_cast %86 : vector<1x1x64x64xbf16> to vector<64x64xbf16>
    %88 = arith.extf %87 : vector<64x64xbf16> to vector<64x64xf32>
    %cst_95 = arith.constant dense<0.000000e+00> : vector<8x64xf32>
    %89 = tpu.matmul %85, %88, %cst_95 {dimension_numbers = #tpu.dot_dimension_numbers<[1], [0], [0], [1], [0, 0, 1, 1], [], []>} : vector<8x64xf32>, vector<64x64xf32>, vector<8x64xf32> -> vector<8x64xf32>
    %90 = arith.addf %82, %89 : vector<8x64xf32>
    %c5 = arith.constant 5 : index
    %c0_96 = arith.constant 0 : index
    %c0_97 = arith.constant 0 : index
    %91 = vector.load %arg3[%c5, %c0_96, %c0_97] : memref<6x8x8xf32, #tpu.memory_space<vmem>>, vector<1x8x8xf32>
    %92 = vector.shape_cast %91 : vector<1x8x8xf32> to vector<8x8xf32>
    %cst_98 = arith.constant dense<0.000000e+00> : vector<8x64xf32>
    %93 = tpu.matmul %92, %17, %cst_98 {dimension_numbers = #tpu.dot_dimension_numbers<[1], [0], [0], [1], [0, 0, 1, 1], [], []>} : vector<8x8xf32>, vector<8x64xf32>, vector<8x64xf32> -> vector<8x64xf32>
    %c0_99 = arith.constant 0 : index
    %c5_100 = arith.constant 5 : index
    %c0_101 = arith.constant 0 : index
    %c0_102 = arith.constant 0 : index
    %94 = vector.load %arg4[%c0_99, %c5_100, %c0_101, %c0_102] : memref<3x6x64x64xbf16, #tpu.memory_space<vmem>>, vector<1x1x64x64xbf16>
    %95 = vector.shape_cast %94 : vector<1x1x64x64xbf16> to vector<64x64xbf16>
    %96 = arith.extf %95 : vector<64x64xbf16> to vector<64x64xf32>
    %cst_103 = arith.constant dense<0.000000e+00> : vector<8x64xf32>
    %97 = tpu.matmul %93, %96, %cst_103 {dimension_numbers = #tpu.dot_dimension_numbers<[1], [0], [0], [1], [0, 0, 1, 1], [], []>} : vector<8x64xf32>, vector<64x64xf32>, vector<8x64xf32> -> vector<8x64xf32>
    %98 = arith.addf %90, %97 : vector<8x64xf32>
    %cst_104 = arith.constant 0.000000e+00 : f32
    %99 = vector.broadcast %cst_104 : f32 to vector<8x64xf32>
    %100 = arith.maximumf %50, %99 : vector<8x64xf32>
    %cst_105 = arith.constant 0.000000e+00 : f32
    %101 = vector.broadcast %cst_105 : f32 to vector<8x64xf32>
    %102 = arith.maximumf %74, %101 : vector<8x64xf32>
    %cst_106 = arith.constant 0.000000e+00 : f32
    %103 = vector.broadcast %cst_106 : f32 to vector<8x64xf32>
    %104 = arith.maximumf %98, %103 : vector<8x64xf32>
    %c1_107 = arith.constant 1 : index
    %c0_108 = arith.constant 0 : index
    %c0_109 = arith.constant 0 : index
    %c0_110 = arith.constant 0 : index
    %105 = vector.load %arg5[%c1_107, %c0_108, %c0_109, %c0_110] : memref<3x3x64x64xbf16, #tpu.memory_space<vmem>>, vector<1x1x64x64xbf16>
    %106 = vector.shape_cast %105 : vector<1x1x64x64xbf16> to vector<64x64xbf16>
    %107 = arith.extf %106 : vector<64x64xbf16> to vector<64x64xf32>
    %cst_111 = arith.constant dense<0.000000e+00> : vector<8x64xf32>
    %108 = tpu.matmul %100, %107, %cst_111 {dimension_numbers = #tpu.dot_dimension_numbers<[1], [0], [0], [1], [0, 0, 1, 1], [], []>} : vector<8x64xf32>, vector<64x64xf32>, vector<8x64xf32> -> vector<8x64xf32>
    %c1_112 = arith.constant 1 : index
    %c0_113 = arith.constant 0 : index
    %c0_114 = arith.constant 0 : index
    %c0_115 = arith.constant 0 : index
    %109 = vector.load %arg6[%c1_112, %c0_113, %c0_114, %c0_115] : memref<3x3x1x64xf32, #tpu.memory_space<vmem>>, vector<1x1x1x64xf32>
    %110 = vector.shape_cast %109 : vector<1x1x1x64xf32> to vector<1x64xf32>
    %111 = vector.broadcast %110 : vector<1x64xf32> to vector<8x64xf32>
    %112 = arith.addf %108, %111 : vector<8x64xf32>
    %c1_116 = arith.constant 1 : index
    %c0_117 = arith.constant 0 : index
    %c0_118 = arith.constant 0 : index
    %113 = vector.load %arg3[%c1_116, %c0_117, %c0_118] : memref<6x8x8xf32, #tpu.memory_space<vmem>>, vector<1x8x8xf32>
    %114 = vector.shape_cast %113 : vector<1x8x8xf32> to vector<8x8xf32>
    %cst_119 = arith.constant dense<0.000000e+00> : vector<8x64xf32>
    %115 = tpu.matmul %114, %102, %cst_119 {dimension_numbers = #tpu.dot_dimension_numbers<[1], [0], [0], [1], [0, 0, 1, 1], [], []>} : vector<8x8xf32>, vector<8x64xf32>, vector<8x64xf32> -> vector<8x64xf32>
    %c1_120 = arith.constant 1 : index
    %c1_121 = arith.constant 1 : index
    %c0_122 = arith.constant 0 : index
    %c0_123 = arith.constant 0 : index
    %116 = vector.load %arg4[%c1_120, %c1_121, %c0_122, %c0_123] : memref<3x6x64x64xbf16, #tpu.memory_space<vmem>>, vector<1x1x64x64xbf16>
    %117 = vector.shape_cast %116 : vector<1x1x64x64xbf16> to vector<64x64xbf16>
    %118 = arith.extf %117 : vector<64x64xbf16> to vector<64x64xf32>
    %cst_124 = arith.constant dense<0.000000e+00> : vector<8x64xf32>
    %119 = tpu.matmul %115, %118, %cst_124 {dimension_numbers = #tpu.dot_dimension_numbers<[1], [0], [0], [1], [0, 0, 1, 1], [], []>} : vector<8x64xf32>, vector<64x64xf32>, vector<8x64xf32> -> vector<8x64xf32>
    %120 = arith.addf %112, %119 : vector<8x64xf32>
    %c3_125 = arith.constant 3 : index
    %c0_126 = arith.constant 0 : index
    %c0_127 = arith.constant 0 : index
    %121 = vector.load %arg3[%c3_125, %c0_126, %c0_127] : memref<6x8x8xf32, #tpu.memory_space<vmem>>, vector<1x8x8xf32>
    %122 = vector.shape_cast %121 : vector<1x8x8xf32> to vector<8x8xf32>
    %cst_128 = arith.constant dense<0.000000e+00> : vector<8x64xf32>
    %123 = tpu.matmul %122, %104, %cst_128 {dimension_numbers = #tpu.dot_dimension_numbers<[1], [0], [0], [1], [0, 0, 1, 1], [], []>} : vector<8x8xf32>, vector<8x64xf32>, vector<8x64xf32> -> vector<8x64xf32>
    %c1_129 = arith.constant 1 : index
    %c3_130 = arith.constant 3 : index
    %c0_131 = arith.constant 0 : index
    %c0_132 = arith.constant 0 : index
    %124 = vector.load %arg4[%c1_129, %c3_130, %c0_131, %c0_132] : memref<3x6x64x64xbf16, #tpu.memory_space<vmem>>, vector<1x1x64x64xbf16>
    %125 = vector.shape_cast %124 : vector<1x1x64x64xbf16> to vector<64x64xbf16>
    %126 = arith.extf %125 : vector<64x64xbf16> to vector<64x64xf32>
    %cst_133 = arith.constant dense<0.000000e+00> : vector<8x64xf32>
    %127 = tpu.matmul %123, %126, %cst_133 {dimension_numbers = #tpu.dot_dimension_numbers<[1], [0], [0], [1], [0, 0, 1, 1], [], []>} : vector<8x64xf32>, vector<64x64xf32>, vector<8x64xf32> -> vector<8x64xf32>
    %128 = arith.addf %120, %127 : vector<8x64xf32>
    %c1_134 = arith.constant 1 : index
    %c1_135 = arith.constant 1 : index
    %c0_136 = arith.constant 0 : index
    %c0_137 = arith.constant 0 : index
    %129 = vector.load %arg5[%c1_134, %c1_135, %c0_136, %c0_137] : memref<3x3x64x64xbf16, #tpu.memory_space<vmem>>, vector<1x1x64x64xbf16>
    %130 = vector.shape_cast %129 : vector<1x1x64x64xbf16> to vector<64x64xbf16>
    %131 = arith.extf %130 : vector<64x64xbf16> to vector<64x64xf32>
    %cst_138 = arith.constant dense<0.000000e+00> : vector<8x64xf32>
    %132 = tpu.matmul %102, %131, %cst_138 {dimension_numbers = #tpu.dot_dimension_numbers<[1], [0], [0], [1], [0, 0, 1, 1], [], []>} : vector<8x64xf32>, vector<64x64xf32>, vector<8x64xf32> -> vector<8x64xf32>
    %c1_139 = arith.constant 1 : index
    %c1_140 = arith.constant 1 : index
    %c0_141 = arith.constant 0 : index
    %c0_142 = arith.constant 0 : index
    %133 = vector.load %arg6[%c1_139, %c1_140, %c0_141, %c0_142] : memref<3x3x1x64xf32, #tpu.memory_space<vmem>>, vector<1x1x1x64xf32>
    %134 = vector.shape_cast %133 : vector<1x1x1x64xf32> to vector<1x64xf32>
    %135 = vector.broadcast %134 : vector<1x64xf32> to vector<8x64xf32>
    %136 = arith.addf %132, %135 : vector<8x64xf32>
    %c0_143 = arith.constant 0 : index
    %c0_144 = arith.constant 0 : index
    %c0_145 = arith.constant 0 : index
    %137 = vector.load %arg3[%c0_143, %c0_144, %c0_145] : memref<6x8x8xf32, #tpu.memory_space<vmem>>, vector<1x8x8xf32>
    %138 = vector.shape_cast %137 : vector<1x8x8xf32> to vector<8x8xf32>
    %cst_146 = arith.constant dense<0.000000e+00> : vector<8x64xf32>
    %139 = tpu.matmul %138, %100, %cst_146 {dimension_numbers = #tpu.dot_dimension_numbers<[1], [0], [0], [1], [0, 0, 1, 1], [], []>} : vector<8x8xf32>, vector<8x64xf32>, vector<8x64xf32> -> vector<8x64xf32>
    %c1_147 = arith.constant 1 : index
    %c0_148 = arith.constant 0 : index
    %c0_149 = arith.constant 0 : index
    %c0_150 = arith.constant 0 : index
    %140 = vector.load %arg4[%c1_147, %c0_148, %c0_149, %c0_150] : memref<3x6x64x64xbf16, #tpu.memory_space<vmem>>, vector<1x1x64x64xbf16>
    %141 = vector.shape_cast %140 : vector<1x1x64x64xbf16> to vector<64x64xbf16>
    %142 = arith.extf %141 : vector<64x64xbf16> to vector<64x64xf32>
    %cst_151 = arith.constant dense<0.000000e+00> : vector<8x64xf32>
    %143 = tpu.matmul %139, %142, %cst_151 {dimension_numbers = #tpu.dot_dimension_numbers<[1], [0], [0], [1], [0, 0, 1, 1], [], []>} : vector<8x64xf32>, vector<64x64xf32>, vector<8x64xf32> -> vector<8x64xf32>
    %144 = arith.addf %136, %143 : vector<8x64xf32>
    %c4_152 = arith.constant 4 : index
    %c0_153 = arith.constant 0 : index
    %c0_154 = arith.constant 0 : index
    %145 = vector.load %arg3[%c4_152, %c0_153, %c0_154] : memref<6x8x8xf32, #tpu.memory_space<vmem>>, vector<1x8x8xf32>
    %146 = vector.shape_cast %145 : vector<1x8x8xf32> to vector<8x8xf32>
    %cst_155 = arith.constant dense<0.000000e+00> : vector<8x64xf32>
    %147 = tpu.matmul %146, %104, %cst_155 {dimension_numbers = #tpu.dot_dimension_numbers<[1], [0], [0], [1], [0, 0, 1, 1], [], []>} : vector<8x8xf32>, vector<8x64xf32>, vector<8x64xf32> -> vector<8x64xf32>
    %c1_156 = arith.constant 1 : index
    %c4_157 = arith.constant 4 : index
    %c0_158 = arith.constant 0 : index
    %c0_159 = arith.constant 0 : index
    %148 = vector.load %arg4[%c1_156, %c4_157, %c0_158, %c0_159] : memref<3x6x64x64xbf16, #tpu.memory_space<vmem>>, vector<1x1x64x64xbf16>
    %149 = vector.shape_cast %148 : vector<1x1x64x64xbf16> to vector<64x64xbf16>
    %150 = arith.extf %149 : vector<64x64xbf16> to vector<64x64xf32>
    %cst_160 = arith.constant dense<0.000000e+00> : vector<8x64xf32>
    %151 = tpu.matmul %147, %150, %cst_160 {dimension_numbers = #tpu.dot_dimension_numbers<[1], [0], [0], [1], [0, 0, 1, 1], [], []>} : vector<8x64xf32>, vector<64x64xf32>, vector<8x64xf32> -> vector<8x64xf32>
    %152 = arith.addf %144, %151 : vector<8x64xf32>
    %c1_161 = arith.constant 1 : index
    %c2_162 = arith.constant 2 : index
    %c0_163 = arith.constant 0 : index
    %c0_164 = arith.constant 0 : index
    %153 = vector.load %arg5[%c1_161, %c2_162, %c0_163, %c0_164] : memref<3x3x64x64xbf16, #tpu.memory_space<vmem>>, vector<1x1x64x64xbf16>
    %154 = vector.shape_cast %153 : vector<1x1x64x64xbf16> to vector<64x64xbf16>
    %155 = arith.extf %154 : vector<64x64xbf16> to vector<64x64xf32>
    %cst_165 = arith.constant dense<0.000000e+00> : vector<8x64xf32>
    %156 = tpu.matmul %104, %155, %cst_165 {dimension_numbers = #tpu.dot_dimension_numbers<[1], [0], [0], [1], [0, 0, 1, 1], [], []>} : vector<8x64xf32>, vector<64x64xf32>, vector<8x64xf32> -> vector<8x64xf32>
    %c1_166 = arith.constant 1 : index
    %c2_167 = arith.constant 2 : index
    %c0_168 = arith.constant 0 : index
    %c0_169 = arith.constant 0 : index
    %157 = vector.load %arg6[%c1_166, %c2_167, %c0_168, %c0_169] : memref<3x3x1x64xf32, #tpu.memory_space<vmem>>, vector<1x1x1x64xf32>
    %158 = vector.shape_cast %157 : vector<1x1x1x64xf32> to vector<1x64xf32>
    %159 = vector.broadcast %158 : vector<1x64xf32> to vector<8x64xf32>
    %160 = arith.addf %156, %159 : vector<8x64xf32>
    %c2_170 = arith.constant 2 : index
    %c0_171 = arith.constant 0 : index
    %c0_172 = arith.constant 0 : index
    %161 = vector.load %arg3[%c2_170, %c0_171, %c0_172] : memref<6x8x8xf32, #tpu.memory_space<vmem>>, vector<1x8x8xf32>
    %162 = vector.shape_cast %161 : vector<1x8x8xf32> to vector<8x8xf32>
    %cst_173 = arith.constant dense<0.000000e+00> : vector<8x64xf32>
    %163 = tpu.matmul %162, %100, %cst_173 {dimension_numbers = #tpu.dot_dimension_numbers<[1], [0], [0], [1], [0, 0, 1, 1], [], []>} : vector<8x8xf32>, vector<8x64xf32>, vector<8x64xf32> -> vector<8x64xf32>
    %c1_174 = arith.constant 1 : index
    %c2_175 = arith.constant 2 : index
    %c0_176 = arith.constant 0 : index
    %c0_177 = arith.constant 0 : index
    %164 = vector.load %arg4[%c1_174, %c2_175, %c0_176, %c0_177] : memref<3x6x64x64xbf16, #tpu.memory_space<vmem>>, vector<1x1x64x64xbf16>
    %165 = vector.shape_cast %164 : vector<1x1x64x64xbf16> to vector<64x64xbf16>
    %166 = arith.extf %165 : vector<64x64xbf16> to vector<64x64xf32>
    %cst_178 = arith.constant dense<0.000000e+00> : vector<8x64xf32>
    %167 = tpu.matmul %163, %166, %cst_178 {dimension_numbers = #tpu.dot_dimension_numbers<[1], [0], [0], [1], [0, 0, 1, 1], [], []>} : vector<8x64xf32>, vector<64x64xf32>, vector<8x64xf32> -> vector<8x64xf32>
    %168 = arith.addf %160, %167 : vector<8x64xf32>
    %c5_179 = arith.constant 5 : index
    %c0_180 = arith.constant 0 : index
    %c0_181 = arith.constant 0 : index
    %169 = vector.load %arg3[%c5_179, %c0_180, %c0_181] : memref<6x8x8xf32, #tpu.memory_space<vmem>>, vector<1x8x8xf32>
    %170 = vector.shape_cast %169 : vector<1x8x8xf32> to vector<8x8xf32>
    %cst_182 = arith.constant dense<0.000000e+00> : vector<8x64xf32>
    %171 = tpu.matmul %170, %102, %cst_182 {dimension_numbers = #tpu.dot_dimension_numbers<[1], [0], [0], [1], [0, 0, 1, 1], [], []>} : vector<8x8xf32>, vector<8x64xf32>, vector<8x64xf32> -> vector<8x64xf32>
    %c1_183 = arith.constant 1 : index
    %c5_184 = arith.constant 5 : index
    %c0_185 = arith.constant 0 : index
    %c0_186 = arith.constant 0 : index
    %172 = vector.load %arg4[%c1_183, %c5_184, %c0_185, %c0_186] : memref<3x6x64x64xbf16, #tpu.memory_space<vmem>>, vector<1x1x64x64xbf16>
    %173 = vector.shape_cast %172 : vector<1x1x64x64xbf16> to vector<64x64xbf16>
    %174 = arith.extf %173 : vector<64x64xbf16> to vector<64x64xf32>
    %cst_187 = arith.constant dense<0.000000e+00> : vector<8x64xf32>
    %175 = tpu.matmul %171, %174, %cst_187 {dimension_numbers = #tpu.dot_dimension_numbers<[1], [0], [0], [1], [0, 0, 1, 1], [], []>} : vector<8x64xf32>, vector<64x64xf32>, vector<8x64xf32> -> vector<8x64xf32>
    %176 = arith.addf %168, %175 : vector<8x64xf32>
    %cst_188 = arith.constant 0.000000e+00 : f32
    %177 = vector.broadcast %cst_188 : f32 to vector<8x64xf32>
    %178 = arith.maximumf %128, %177 : vector<8x64xf32>
    %cst_189 = arith.constant 0.000000e+00 : f32
    %179 = vector.broadcast %cst_189 : f32 to vector<8x64xf32>
    %180 = arith.maximumf %152, %179 : vector<8x64xf32>
    %cst_190 = arith.constant 0.000000e+00 : f32
    %181 = vector.broadcast %cst_190 : f32 to vector<8x64xf32>
    %182 = arith.maximumf %176, %181 : vector<8x64xf32>
    %c2_191 = arith.constant 2 : index
    %c0_192 = arith.constant 0 : index
    %c0_193 = arith.constant 0 : index
    %c0_194 = arith.constant 0 : index
    %183 = vector.load %arg5[%c2_191, %c0_192, %c0_193, %c0_194] : memref<3x3x64x64xbf16, #tpu.memory_space<vmem>>, vector<1x1x64x64xbf16>
    %184 = vector.shape_cast %183 : vector<1x1x64x64xbf16> to vector<64x64xbf16>
    %185 = arith.extf %184 : vector<64x64xbf16> to vector<64x64xf32>
    %cst_195 = arith.constant dense<0.000000e+00> : vector<8x64xf32>
    %186 = tpu.matmul %178, %185, %cst_195 {dimension_numbers = #tpu.dot_dimension_numbers<[1], [0], [0], [1], [0, 0, 1, 1], [], []>} : vector<8x64xf32>, vector<64x64xf32>, vector<8x64xf32> -> vector<8x64xf32>
    %c2_196 = arith.constant 2 : index
    %c0_197 = arith.constant 0 : index
    %c0_198 = arith.constant 0 : index
    %c0_199 = arith.constant 0 : index
    %187 = vector.load %arg6[%c2_196, %c0_197, %c0_198, %c0_199] : memref<3x3x1x64xf32, #tpu.memory_space<vmem>>, vector<1x1x1x64xf32>
    %188 = vector.shape_cast %187 : vector<1x1x1x64xf32> to vector<1x64xf32>
    %189 = vector.broadcast %188 : vector<1x64xf32> to vector<8x64xf32>
    %190 = arith.addf %186, %189 : vector<8x64xf32>
    %c1_200 = arith.constant 1 : index
    %c0_201 = arith.constant 0 : index
    %c0_202 = arith.constant 0 : index
    %191 = vector.load %arg3[%c1_200, %c0_201, %c0_202] : memref<6x8x8xf32, #tpu.memory_space<vmem>>, vector<1x8x8xf32>
    %192 = vector.shape_cast %191 : vector<1x8x8xf32> to vector<8x8xf32>
    %cst_203 = arith.constant dense<0.000000e+00> : vector<8x64xf32>
    %193 = tpu.matmul %192, %180, %cst_203 {dimension_numbers = #tpu.dot_dimension_numbers<[1], [0], [0], [1], [0, 0, 1, 1], [], []>} : vector<8x8xf32>, vector<8x64xf32>, vector<8x64xf32> -> vector<8x64xf32>
    %c2_204 = arith.constant 2 : index
    %c1_205 = arith.constant 1 : index
    %c0_206 = arith.constant 0 : index
    %c0_207 = arith.constant 0 : index
    %194 = vector.load %arg4[%c2_204, %c1_205, %c0_206, %c0_207] : memref<3x6x64x64xbf16, #tpu.memory_space<vmem>>, vector<1x1x64x64xbf16>
    %195 = vector.shape_cast %194 : vector<1x1x64x64xbf16> to vector<64x64xbf16>
    %196 = arith.extf %195 : vector<64x64xbf16> to vector<64x64xf32>
    %cst_208 = arith.constant dense<0.000000e+00> : vector<8x64xf32>
    %197 = tpu.matmul %193, %196, %cst_208 {dimension_numbers = #tpu.dot_dimension_numbers<[1], [0], [0], [1], [0, 0, 1, 1], [], []>} : vector<8x64xf32>, vector<64x64xf32>, vector<8x64xf32> -> vector<8x64xf32>
    %198 = arith.addf %190, %197 : vector<8x64xf32>
    %c3_209 = arith.constant 3 : index
    %c0_210 = arith.constant 0 : index
    %c0_211 = arith.constant 0 : index
    %199 = vector.load %arg3[%c3_209, %c0_210, %c0_211] : memref<6x8x8xf32, #tpu.memory_space<vmem>>, vector<1x8x8xf32>
    %200 = vector.shape_cast %199 : vector<1x8x8xf32> to vector<8x8xf32>
    %cst_212 = arith.constant dense<0.000000e+00> : vector<8x64xf32>
    %201 = tpu.matmul %200, %182, %cst_212 {dimension_numbers = #tpu.dot_dimension_numbers<[1], [0], [0], [1], [0, 0, 1, 1], [], []>} : vector<8x8xf32>, vector<8x64xf32>, vector<8x64xf32> -> vector<8x64xf32>
    %c2_213 = arith.constant 2 : index
    %c3_214 = arith.constant 3 : index
    %c0_215 = arith.constant 0 : index
    %c0_216 = arith.constant 0 : index
    %202 = vector.load %arg4[%c2_213, %c3_214, %c0_215, %c0_216] : memref<3x6x64x64xbf16, #tpu.memory_space<vmem>>, vector<1x1x64x64xbf16>
    %203 = vector.shape_cast %202 : vector<1x1x64x64xbf16> to vector<64x64xbf16>
    %204 = arith.extf %203 : vector<64x64xbf16> to vector<64x64xf32>
    %cst_217 = arith.constant dense<0.000000e+00> : vector<8x64xf32>
    %205 = tpu.matmul %201, %204, %cst_217 {dimension_numbers = #tpu.dot_dimension_numbers<[1], [0], [0], [1], [0, 0, 1, 1], [], []>} : vector<8x64xf32>, vector<64x64xf32>, vector<8x64xf32> -> vector<8x64xf32>
    %206 = arith.addf %198, %205 : vector<8x64xf32>
    %c2_218 = arith.constant 2 : index
    %c1_219 = arith.constant 1 : index
    %c0_220 = arith.constant 0 : index
    %c0_221 = arith.constant 0 : index
    %207 = vector.load %arg5[%c2_218, %c1_219, %c0_220, %c0_221] : memref<3x3x64x64xbf16, #tpu.memory_space<vmem>>, vector<1x1x64x64xbf16>
    %208 = vector.shape_cast %207 : vector<1x1x64x64xbf16> to vector<64x64xbf16>
    %209 = arith.extf %208 : vector<64x64xbf16> to vector<64x64xf32>
    %cst_222 = arith.constant dense<0.000000e+00> : vector<8x64xf32>
    %210 = tpu.matmul %180, %209, %cst_222 {dimension_numbers = #tpu.dot_dimension_numbers<[1], [0], [0], [1], [0, 0, 1, 1], [], []>} : vector<8x64xf32>, vector<64x64xf32>, vector<8x64xf32> -> vector<8x64xf32>
    %c2_223 = arith.constant 2 : index
    %c1_224 = arith.constant 1 : index
    %c0_225 = arith.constant 0 : index
    %c0_226 = arith.constant 0 : index
    %211 = vector.load %arg6[%c2_223, %c1_224, %c0_225, %c0_226] : memref<3x3x1x64xf32, #tpu.memory_space<vmem>>, vector<1x1x1x64xf32>
    %212 = vector.shape_cast %211 : vector<1x1x1x64xf32> to vector<1x64xf32>
    %213 = vector.broadcast %212 : vector<1x64xf32> to vector<8x64xf32>
    %214 = arith.addf %210, %213 : vector<8x64xf32>
    %c0_227 = arith.constant 0 : index
    %c0_228 = arith.constant 0 : index
    %c0_229 = arith.constant 0 : index
    %215 = vector.load %arg3[%c0_227, %c0_228, %c0_229] : memref<6x8x8xf32, #tpu.memory_space<vmem>>, vector<1x8x8xf32>
    %216 = vector.shape_cast %215 : vector<1x8x8xf32> to vector<8x8xf32>
    %cst_230 = arith.constant dense<0.000000e+00> : vector<8x64xf32>
    %217 = tpu.matmul %216, %178, %cst_230 {dimension_numbers = #tpu.dot_dimension_numbers<[1], [0], [0], [1], [0, 0, 1, 1], [], []>} : vector<8x8xf32>, vector<8x64xf32>, vector<8x64xf32> -> vector<8x64xf32>
    %c2_231 = arith.constant 2 : index
    %c0_232 = arith.constant 0 : index
    %c0_233 = arith.constant 0 : index
    %c0_234 = arith.constant 0 : index
    %218 = vector.load %arg4[%c2_231, %c0_232, %c0_233, %c0_234] : memref<3x6x64x64xbf16, #tpu.memory_space<vmem>>, vector<1x1x64x64xbf16>
    %219 = vector.shape_cast %218 : vector<1x1x64x64xbf16> to vector<64x64xbf16>
    %220 = arith.extf %219 : vector<64x64xbf16> to vector<64x64xf32>
    %cst_235 = arith.constant dense<0.000000e+00> : vector<8x64xf32>
    %221 = tpu.matmul %217, %220, %cst_235 {dimension_numbers = #tpu.dot_dimension_numbers<[1], [0], [0], [1], [0, 0, 1, 1], [], []>} : vector<8x64xf32>, vector<64x64xf32>, vector<8x64xf32> -> vector<8x64xf32>
    %222 = arith.addf %214, %221 : vector<8x64xf32>
    %c4_236 = arith.constant 4 : index
    %c0_237 = arith.constant 0 : index
    %c0_238 = arith.constant 0 : index
    %223 = vector.load %arg3[%c4_236, %c0_237, %c0_238] : memref<6x8x8xf32, #tpu.memory_space<vmem>>, vector<1x8x8xf32>
    %224 = vector.shape_cast %223 : vector<1x8x8xf32> to vector<8x8xf32>
    %cst_239 = arith.constant dense<0.000000e+00> : vector<8x64xf32>
    %225 = tpu.matmul %224, %182, %cst_239 {dimension_numbers = #tpu.dot_dimension_numbers<[1], [0], [0], [1], [0, 0, 1, 1], [], []>} : vector<8x8xf32>, vector<8x64xf32>, vector<8x64xf32> -> vector<8x64xf32>
    %c2_240 = arith.constant 2 : index
    %c4_241 = arith.constant 4 : index
    %c0_242 = arith.constant 0 : index
    %c0_243 = arith.constant 0 : index
    %226 = vector.load %arg4[%c2_240, %c4_241, %c0_242, %c0_243] : memref<3x6x64x64xbf16, #tpu.memory_space<vmem>>, vector<1x1x64x64xbf16>
    %227 = vector.shape_cast %226 : vector<1x1x64x64xbf16> to vector<64x64xbf16>
    %228 = arith.extf %227 : vector<64x64xbf16> to vector<64x64xf32>
    %cst_244 = arith.constant dense<0.000000e+00> : vector<8x64xf32>
    %229 = tpu.matmul %225, %228, %cst_244 {dimension_numbers = #tpu.dot_dimension_numbers<[1], [0], [0], [1], [0, 0, 1, 1], [], []>} : vector<8x64xf32>, vector<64x64xf32>, vector<8x64xf32> -> vector<8x64xf32>
    %230 = arith.addf %222, %229 : vector<8x64xf32>
    %231 = tpu.iota {dimensions = array<i32: 1>} : vector<8x8xi32>
    %c0_245 = arith.constant 0 : index
    %c0_246 = arith.constant 0 : index
    %c0_247 = arith.constant 0 : index
    %232 = vector.load %arg7[%c0_245, %c0_246, %c0_247] : memref<2x8x1xi32, #tpu.memory_space<vmem>>, vector<1x8x1xi32>
    %233 = vector.shape_cast %232 : vector<1x8x1xi32> to vector<8x1xi32>
    %234 = vector.broadcast %233 : vector<8x1xi32> to vector<8x8xi32>
    %235 = arith.cmpi eq, %231, %234 : vector<8x8xi32>
    %236 = arith.extui %235 : vector<8x8xi1> to vector<8x8xi32>
    %237 = arith.sitofp %236 : vector<8x8xi32> to vector<8x8xf32>
    %c1_248 = arith.constant 1 : index
    %c0_249 = arith.constant 0 : index
    %c0_250 = arith.constant 0 : index
    %238 = vector.load %arg7[%c1_248, %c0_249, %c0_250] : memref<2x8x1xi32, #tpu.memory_space<vmem>>, vector<1x8x1xi32>
    %239 = vector.shape_cast %238 : vector<1x8x1xi32> to vector<8x1xi32>
    %240 = vector.broadcast %239 : vector<8x1xi32> to vector<8x8xi32>
    %241 = arith.cmpi eq, %231, %240 : vector<8x8xi32>
    %242 = arith.extui %241 : vector<8x8xi1> to vector<8x8xi32>
    %243 = arith.sitofp %242 : vector<8x8xi32> to vector<8x8xf32>
    %cst_251 = arith.constant dense<0.000000e+00> : vector<8x64xf32>
    %244 = tpu.matmul %237, %206, %cst_251 {dimension_numbers = #tpu.dot_dimension_numbers<[1], [0], [0], [1], [0, 0, 1, 1], [], []>} : vector<8x8xf32>, vector<8x64xf32>, vector<8x64xf32> -> vector<8x64xf32>
    %cst_252 = arith.constant dense<0.000000e+00> : vector<8x64xf32>
    %245 = tpu.matmul %243, %230, %cst_252 {dimension_numbers = #tpu.dot_dimension_numbers<[1], [0], [0], [1], [0, 0, 1, 1], [], []>} : vector<8x8xf32>, vector<8x64xf32>, vector<8x64xf32> -> vector<8x64xf32>
    %246 = arith.mulf %244, %245 : vector<8x64xf32>
    %cst_253 = arith.constant dense<0.000000e+00> : vector<8xf32>
    %247 = vector.multi_reduction <add>, %246, %cst_253 [1] : vector<8x64xf32> to vector<8xf32>
    %248 = vector.shape_cast %247 : vector<8xf32> to vector<8x1xf32>
    %c0_254 = arith.constant 0 : index
    %c0_255 = arith.constant 0 : index
    %249 = vector.load %arg8[%c0_254, %c0_255] : memref<8x1xf32, #tpu.memory_space<vmem>>, vector<8x1xf32>
    tpu.vector_store %arg8[%c0_254, %c0_255], %248 {strides = array<i32>} : memref<8x1xf32, #tpu.memory_space<vmem>>, vector<8x1xf32>,
    return
  }
}

</mosaic_0001>

<bundles_post_ra>
// kernel: model_forward.1
= control target key start
LH: loop header
LB: loop body
LE: loop exit
PB: predicated region body
PF: predicated region fallthrough
CT: control target
= control target key end

     0   :  { %vm1525_vm0 = vcmask 523264   ;;  %vm1551_vm1 = vcmask 64512   ;;  %vm2942_vm4 = vcmask 7168   ;;  %s5533_s1 = inlined_call_operand.vmem [shape: bf16[3,768,64], index: 1, kind: input, shape index: {}]   ;;  %s5534_s0 = inlined_call_operand.vmem [shape: bf16[3,8,768], index: 0, kind: input, shape index: {}]   ;;  %s5535_s2 = inlined_call_operand.vmem [shape: f32[3,1,64], index: 2, kind: input, shape index: {}]   ;;  %s5536_s5 = inlined_call_operand.vmem [shape: bf16[3,3,64,64], index: 5, kind: input, shape index: {}]   ;;  %s5537_s4 = inlined_call_operand.vmem [shape: bf16[3,6,64,64], index: 4, kind: input, shape index: {}]   ;;  %s5538_s6 = inlined_call_operand.vmem [shape: f32[3,3,1,64], index: 6, kind: input, shape index: {}]   ;;  %s5539_s3 = inlined_call_operand.vmem [shape: f32[6,8,8], index: 3, kind: input, shape index: {}]   ;;  %s5540_s7 = inlined_call_operand.vmem [shape: s32[2,8,1], index: 7, kind: input, shape index: {}]   ;;  %s5541_s8 = inlined_call_operand.vmem [shape: f32[8,1], index: 8, kind: output, shape index: {}]  }
   0x1   :  { %v3964_v0 = vld [vmem:[%s5533_s1 + $0x38] sm:$0xff]  ;;  %v3963_v4 = vld [vmem:[%s5533_s1 + $0x30] sm:$0xff]  ;;  %v3962_v8 = vld [vmem:[%s5533_s1 + $0x28] sm:$0xff] }
   0x2   :  { %v3972_v1 = vld [vmem:[%s5533_s1 + $0x78] sm:$0xff]  ;;  %441 = vmatpush.bf16.msra.mxu0 %v3964_v0  ;;  %v3971_v5 = vld [vmem:[%s5533_s1 + $0x70] sm:$0xff]  ;;  %v3970_v9 = vld [vmem:[%s5533_s1 + $0x68] sm:$0xff] }
   0x3   :  { %v3980_v2 = vld [vmem:[%s5533_s1 + $0xb8] sm:$0xff]  ;;  %454 = vmatpush.bf16.msra.mxu1 %v3972_v1  ;;  %v3979_v6 = vld [vmem:[%s5533_s1 + $0xb0] sm:$0xff]  ;;  %v3978_v10 = vld [vmem:[%s5533_s1 + $0xa8] sm:$0xff] }
   0x4   :  { %v3988_v3 = vld [vmem:[%s5533_s1 + $0xf8] sm:$0xff]  ;;  %467 = vmatpush.bf16.msra.mxu2 %v3980_v2  ;;  %v3987_v7 = vld [vmem:[%s5533_s1 + $0xf0] sm:$0xff]  ;;  %v3986_v11 = vld [vmem:[%s5533_s1 + $0xe8] sm:$0xff] }
   0x5   :  { %480 = vmatpush.bf16.msra.mxu3 %v3988_v3  ;;  %v3961_v12 = vld [vmem:[%s5533_s1 + $0x20] sm:$0xff]  ;;  %v3960_v16 = vld [vmem:[%s5533_s1 + $0x18] sm:$0xff]  ;;  %v3959_v20 = vld [vmem:[%s5533_s1 + $0x10] sm:$0xff] }
   0x6   :  { %442 = vmatpush.bf16.msra.mxu0 %v3963_v4  ;;  %v3969_v13 = vld [vmem:[%s5533_s1 + $0x60] sm:$0xff]  ;;  %v3968_v17 = vld [vmem:[%s5533_s1 + $0x58] sm:$0xff]  ;;  %v3967_v21 = vld [vmem:[%s5533_s1 + $0x50] sm:$0xff] }
   0x7   :  { %455 = vmatpush.bf16.msra.mxu1 %v3971_v5  ;;  %v3977_v14 = vld [vmem:[%s5533_s1 + $0xa0] sm:$0xff]  ;;  %v3976_v18 = vld [vmem:[%s5533_s1 + $0x98] sm:$0xff]  ;;  %v3975_v22 = vld [vmem:[%s5533_s1 + $0x90] sm:$0xff] }
   0x8   :  { %468 = vmatpush.bf16.msra.mxu2 %v3979_v6  ;;  %v3985_v15 = vld [vmem:[%s5533_s1 + $0xe0] sm:$0xff]  ;;  %v3984_v19 = vld [vmem:[%s5533_s1 + $0xd8] sm:$0xff]  ;;  %v3983_v23 = vld [vmem:[%s5533_s1 + $0xd0] sm:$0xff] }
   0x9   :  { %481 = vmatpush.bf16.msra.mxu3 %v3987_v7  ;;  %v3958_v24 = vld [vmem:[%s5533_s1 + $0x8] sm:$0xff]  ;;  %v29_v29 = vld [vmem:[%s5534_s0] sm:$0xff]  ;;  %v3996_v38 = vld [vmem:[%s5533_s1 + $0x138] sm:$0xff] }
   0xa   :  { %443 = vmatpush.bf16.msra.mxu0 %v3962_v8  ;;  %v3966_v25 = vld [vmem:[%s5533_s1 + $0x48] sm:$0xff]  ;;  %v3957_v30 = vld [vmem:[%s5533_s1] sm:$0xff]  ;;  %v135_v33 = vunpack.c.l.b16 %v29_v29  ;;  %v136_v37 = vunpack.c.h.b16 %v29_v29  ;;  %v4004_v39 = vld [vmem:[%s5533_s1 + $0x178] sm:$0xff] }
   0xb   :  { %456 = vmatpush.bf16.msra.mxu1 %v3970_v9  ;;  %v3974_v26 = vld [vmem:[%s5533_s1 + $0x88] sm:$0xff]  ;;  %v3965_v31 = vld [vmem:[%s5533_s1 + $0x40] sm:$0xff]  ;;  %v4012_v40 = vld [vmem:[%s5533_s1 + $0x1b8] sm:$0xff] }
   0xc   :  { %469 = vmatpush.bf16.msra.mxu2 %v3978_v10  ;;  %v3982_v27 = vld [vmem:[%s5533_s1 + $0xc8] sm:$0xff]  ;;  %v3973_v34 = vld [vmem:[%s5533_s1 + $0x80] sm:$0xff]  ;;  %v4020_v41 = vld [vmem:[%s5533_s1 + $0x1f8] sm:$0xff]  ;;  %v141_v43 = vpack.c.b16 %v135_v33, %v135_v33  ;;  %v142_v45 = vpack.c.b16 %v136_v37, %v136_v37 }
   0xd   :  { %482 = vmatpush.bf16.msra.mxu3 %v3986_v11  ;;  %v30_v28 = vld [vmem:[%s5534_s0 + $0x8] sm:$0xff]  ;;  %v3981_v35 = vld [vmem:[%s5533_s1 + $0xc0] sm:$0xff]  ;;  %v3995_v46 = vld [vmem:[%s5533_s1 + $0x130] sm:$0xff] }
   0xe   :  { %444 = vmatpush.bf16.msra.mxu0 %v3961_v12  ;;  %v137_v32 = vunpack.c.l.b16 %v30_v28  ;;  %v138_v36 = vunpack.c.h.b16 %v30_v28  ;;  %v4003_v47 = vld [vmem:[%s5533_s1 + $0x170] sm:$0xff]  ;;  %v3994_v50 = vld [vmem:[%s5533_s1 + $0x128] sm:$0xff]  ;;  %v3993_v54 = vld [vmem:[%s5533_s1 + $0x120] sm:$0xff] }
   0xf   :  { %457 = vmatpush.bf16.msra.mxu1 %v3969_v13  ;;  %v4011_v48 = vld [vmem:[%s5533_s1 + $0x1b0] sm:$0xff]  ;;  %v4002_v51 = vld [vmem:[%s5533_s1 + $0x168] sm:$0xff]  ;;  %v4001_v55 = vld [vmem:[%s5533_s1 + $0x160] sm:$0xff] }
  0x10   :  { %470 = vmatpush.bf16.msra.mxu2 %v3977_v14  ;;  %v143_v42 = vpack.c.b16 %v137_v32, %v137_v32  ;;  %v144_v44 = vpack.c.b16 %v138_v36, %v138_v36  ;;  %v4019_v49 = vld [vmem:[%s5533_s1 + $0x1f0] sm:$0xff]  ;;  %v4010_v52 = vld [vmem:[%s5533_s1 + $0x1a8] sm:$0xff]  ;;  %v4009_v56 = vld [vmem:[%s5533_s1 + $0x1a0] sm:$0xff] }
  0x11   :  { %483 = vmatpush.bf16.msra.mxu3 %v3985_v15  ;;  %v4018_v53 = vld [vmem:[%s5533_s1 + $0x1e8] sm:$0xff]  ;;  %v4017_v57 = vld [vmem:[%s5533_s1 + $0x1e0] sm:$0xff]  ;;  %v3992_v58 = vld [vmem:[%s5533_s1 + $0x118] sm:$0xff] }
  0x12   :  { %445 = vmatpush.bf16.msra.mxu0 %v3960_v16  ;;  %v4000_v59 = vld [vmem:[%s5533_s1 + $0x158] sm:$0xff]  ;;  %v3991_v62 = vld [vmem:[%s5533_s1 + $0x110] sm:$0xff]  ;;  %v3990_v2 = vld [vmem:[%s5533_s1 + $0x108] sm:$0xff] }
  0x13   :  { %458 = vmatpush.bf16.msra.mxu1 %v3968_v17  ;;  %v4008_v60 = vld [vmem:[%s5533_s1 + $0x198] sm:$0xff]  ;;  %v3999_v63 = vld [vmem:[%s5533_s1 + $0x150] sm:$0xff]  ;;  %v3998_v3 = vld [vmem:[%s5533_s1 + $0x148] sm:$0xff] }
  0x14   :  { %471 = vmatpush.bf16.msra.mxu2 %v3976_v18  ;;  %v4016_v61 = vld [vmem:[%s5533_s1 + $0x1d8] sm:$0xff]  ;;  %v4007_v0 = vld [vmem:[%s5533_s1 + $0x190] sm:$0xff]  ;;  %v4006_v4 = vld [vmem:[%s5533_s1 + $0x188] sm:$0xff] }
  0x15   :  { %484 = vmatpush.bf16.msra.mxu3 %v3984_v19  ;;  %v4015_v1 = vld [vmem:[%s5533_s1 + $0x1d0] sm:$0xff]  ;;  %v4014_v5 = vld [vmem:[%s5533_s1 + $0x1c8] sm:$0xff]  ;;  %v3140_v6 = vld [vmem:[%s5534_s0 + $0x18] sm:$0xff] }
  0x16   :  { %446 = vmatpush.bf16.msra.mxu0 %v3959_v20  ;;  %v31_v7 = vld [vmem:[%s5534_s0 + $0x10] sm:$0xff]  ;;  %v3989_v8 = vld [vmem:[%s5533_s1 + $0x100] sm:$0xff]  ;;  %v628_v10 = vunpack.c.l.b16 %v3140_v6  ;;  %v629_v14 = vunpack.c.h.b16 %v3140_v6  ;;  %v4028_v16 = vld [vmem:[%s5533_s1 + $0x238] sm:$0xff] }
  0x17   :  { %459 = vmatpush.bf16.msra.mxu1 %v3967_v21  ;;  %v3997_v9 = vld [vmem:[%s5533_s1 + $0x140] sm:$0xff]  ;;  %v139_v11 = vunpack.c.l.b16 %v31_v7  ;;  %v140_v15 = vunpack.c.h.b16 %v31_v7  ;;  %v4036_v17 = vld [vmem:[%s5533_s1 + $0x278] sm:$0xff]  ;;  %v4026_v28 = vld [vmem:[%s5533_s1 + $0x228] sm:$0xff] }
  0x18   :  { %472 = vmatpush.bf16.msra.mxu2 %v3975_v22  ;;  %v4005_v12 = vld [vmem:[%s5533_s1 + $0x180] sm:$0xff]  ;;  %v4044_v18 = vld [vmem:[%s5533_s1 + $0x2b8] sm:$0xff]  ;;  %v634_v20 = vpack.c.b16 %v628_v10, %v628_v10  ;;  %v635_v22 = vpack.c.b16 %v629_v14, %v629_v14  ;;  %v4034_v29 = vld [vmem:[%s5533_s1 + $0x268] sm:$0xff] }
  0x19   :  { %485 = vmatpush.bf16.msra.mxu3 %v3983_v23  ;;  %v4013_v13 = vld [vmem:[%s5533_s1 + $0x1c0] sm:$0xff]  ;;  %v4052_v19 = vld [vmem:[%s5533_s1 + $0x2f8] sm:$0xff]  ;;  %v145_v21 = vpack.c.b16 %v139_v11, %v139_v11  ;;  %v146_v23 = vpack.c.b16 %v140_v15, %v140_v15  ;;  %v4058_v6 = vld [vmem:[%s5533_s1 + $0x328] sm:$0xff] }
  0x1a   :  { %447 = vmatpush.bf16.msra.mxu0 %v3958_v24  ;;  %v4027_v24 = vld [vmem:[%s5533_s1 + $0x230] sm:$0xff]  ;;  %v4025_v32 = vld [vmem:[%s5533_s1 + $0x220] sm:$0xff]  ;;  %v4024_v36 = vld [vmem:[%s5533_s1 + $0x218] sm:$0xff] }
  0x1b   :  { %460 = vmatpush.bf16.msra.mxu1 %v3966_v25  ;;  %v4035_v25 = vld [vmem:[%s5533_s1 + $0x270] sm:$0xff]  ;;  %v4033_v33 = vld [vmem:[%s5533_s1 + $0x260] sm:$0xff]  ;;  %v4032_v37 = vld [vmem:[%s5533_s1 + $0x258] sm:$0xff] }
  0x1c   :  { %473 = vmatpush.bf16.msra.mxu2 %v3974_v26  ;;  %v4043_v26 = vld [vmem:[%s5533_s1 + $0x2b0] sm:$0xff]  ;;  %v4066_v7 = vld [vmem:[%s5533_s1 + $0x368] sm:$0xff]  ;;  %v4057_v10 = vld [vmem:[%s5533_s1 + $0x320] sm:$0xff] }
  0x1d   :  { %486 = vmatpush.bf16.msra.mxu3 %v3982_v27  ;;  %v4051_v27 = vld [vmem:[%s5533_s1 + $0x2f0] sm:$0xff]  ;;  %v4065_v11 = vld [vmem:[%s5533_s1 + $0x360] sm:$0xff]  ;;  %v4056_v14 = vld [vmem:[%s5533_s1 + $0x318] sm:$0xff] }
  0x1e   :  { %448 = vmatpush.bf16.msra.mxu0 %v3957_v30  ;;  %v4042_v30 = vld [vmem:[%s5533_s1 + $0x2a8] sm:$0xff]  ;;  %v4064_v15 = vld [vmem:[%s5533_s1 + $0x358] sm:$0xff] }
  0x1f   :  { %461 = vmatpush.bf16.msra.mxu1 %v3965_v31  ;;  %v4050_v31 = vld [vmem:[%s5533_s1 + $0x2e8] sm:$0xff] }
  0x20   :  { %474 = vmatpush.bf16.msra.mxu2 %v3973_v34  ;;  %v4041_v34 = vld [vmem:[%s5533_s1 + $0x2a0] sm:$0xff] }
  0x21   :  { %487 = vmatpush.bf16.msra.mxu3 %v3981_v35  ;;  %449 = vmatmul.bf16.vlgmr.msra.gmra.mxu0 %v141_v43  ;;  %v4049_v35 = vld [vmem:[%s5533_s1 + $0x2e0] sm:$0xff]  ;;  %v4047_v43 = vld [vmem:[%s5533_s1 + $0x2d0] sm:$0xff] }
  0x22   :  { %493 = vmatpush.bf16.msrb.mxu0 %v3996_v38  ;;  %462 = vmatmul.bf16.vlgmr.msra.gmra.mxu1 %v142_v45  ;;  %v4040_v38 = vld [vmem:[%s5533_s1 + $0x298] sm:$0xff]  ;;  %v4030_v45 = vld [vmem:[%s5533_s1 + $0x248] sm:$0xff] }
  0x23   :  { %506 = vmatpush.bf16.msrb.mxu1 %v4004_v39  ;;  %475 = vmatmul.bf16.vlgmr.msra.gmra.mxu2 %v143_v42  ;;  %v4048_v39 = vld [vmem:[%s5533_s1 + $0x2d8] sm:$0xff]  ;;  %v4039_v42 = vld [vmem:[%s5533_s1 + $0x290] sm:$0xff] }
  0x24   :  { %934 = vmatpush.bf16.msrb.mxu2 %v4012_v40  ;;  %488 = vmatmul.bf16.vlgmr.msra.gmra.mxu3 %v144_v44  ;;  %v4023_v40 = vld [vmem:[%s5533_s1 + $0x210] sm:$0xff]  ;;  %v4022_v44 = vld [vmem:[%s5533_s1 + $0x208] sm:$0xff] }
  0x25   :  { %947 = vmatpush.bf16.msrb.mxu3 %v4020_v41  ;;  %v4031_v41 = vld [vmem:[%s5533_s1 + $0x250] sm:$0xff] }
  0x26   :  { %494 = vmatpush.bf16.msrb.mxu0 %v3995_v46  ;;  %v3141_v46 = vld [vmem:[%s5534_s0 + $0x20] sm:$0xff] }
  0x27   :  { %507 = vmatpush.bf16.msrb.mxu1 %v4003_v47  ;;  %v4038_v47 = vld [vmem:[%s5533_s1 + $0x288] sm:$0xff] }
  0x28   :  { %935 = vmatpush.bf16.msrb.mxu2 %v4011_v48  ;;  %v4046_v48 = vld [vmem:[%s5533_s1 + $0x2c8] sm:$0xff] }
  0x29   :  { %948 = vmatpush.bf16.msrb.mxu3 %v4019_v49  ;;  %v3142_v49 = vld [vmem:[%s5534_s0 + $0x28] sm:$0xff] }
  0x2a   :  { %495 = vmatpush.bf16.msrb.mxu0 %v3994_v50  ;;  %v630_v50 = vunpack.c.l.b16 %v3141_v46 }
  0x2b   :  { %508 = vmatpush.bf16.msrb.mxu1 %v4002_v51  ;;  %v631_v51 = vunpack.c.h.b16 %v3141_v46  ;;  %v4486_v46 = vld [vmem:[%s5536_s5 + $0x10] sm:$0xff]  }
  0x2c   :  { %936 = vmatpush.bf16.msrb.mxu2 %v4010_v52  ;;  %v4021_v52 = vld [vmem:[%s5533_s1 + $0x200] sm:$0xff] }
  0x2d   :  { %949 = vmatpush.bf16.msrb.mxu3 %v4018_v53  ;;  %v4029_v53 = vld [vmem:[%s5533_s1 + $0x240] sm:$0xff] }
  0x2e   :  { %496 = vmatpush.bf16.msrb.mxu0 %v3993_v54  ;;  %v632_v54 = vunpack.c.l.b16 %v3142_v49 }
  0x2f   :  { %509 = vmatpush.bf16.msrb.mxu1 %v4001_v55  ;;  %v633_v55 = vunpack.c.h.b16 %v3142_v49  ;;  %v4098_v49 = vld [vmem:[%s5533_s1 + $0x468] sm:$0xff] }
  0x30   :  { %937 = vmatpush.bf16.msrb.mxu2 %v4009_v56  ;;  %v4037_v56 = vld [vmem:[%s5533_s1 + $0x280] sm:$0xff] }
  0x31   :  { %950 = vmatpush.bf16.msrb.mxu3 %v4017_v57  ;;  %v4045_v57 = vld [vmem:[%s5533_s1 + $0x2c0] sm:$0xff] }
  0x32   :  { %497 = vmatpush.bf16.msrb.mxu0 %v3992_v58  ;;  %v4060_v58 = vld [vmem:[%s5533_s1 + $0x338] sm:$0xff] }
  0x33   :  { %510 = vmatpush.bf16.msrb.mxu1 %v4000_v59  ;;  %v4068_v59 = vld [vmem:[%s5533_s1 + $0x378] sm:$0xff] }
  0x34   :  { %938 = vmatpush.bf16.msrb.mxu2 %v4008_v60  ;;  %v636_v60 = vpack.c.b16 %v630_v50, %v630_v50  ;;  %v4112_v50 = vunpack.c.h.bf16 %v4486_v46 }
  0x35   :  { %951 = vmatpush.bf16.msrb.mxu3 %v4016_v61  ;;  %v637_v61 = vpack.c.b16 %v631_v51, %v631_v51  ;;  %v4485_v51 = vld [vmem:[%s5536_s5 + $0x8] sm:$0xff]  }
  0x36   :  { %498 = vmatpush.bf16.msrb.mxu0 %v3991_v62  ;;  %v638_v62 = vpack.c.b16 %v632_v54, %v632_v54  ;;  %v4097_v54 = vld [vmem:[%s5533_s1 + $0x460] sm:$0xff] }
  0x37   :  { %511 = vmatpush.bf16.msrb.mxu1 %v3999_v63  ;;  %v639_v63 = vpack.c.b16 %v633_v55, %v633_v55  ;;  %v4108_v55 = vunpack.c.h.bf16 %v4485_v51 }
  0x38   :  { %939 = vmatpush.bf16.msrb.mxu2 %v4007_v0  ;;  %v4076_v0 = vld [vmem:[%s5533_s1 + $0x3b8] sm:$0xff] }
  0x39   :  { %952 = vmatpush.bf16.msrb.mxu3 %v4015_v1  ;;  %v4084_v1 = vld [vmem:[%s5533_s1 + $0x3f8] sm:$0xff] }
  0x3a   :  { %499 = vmatpush.bf16.msrb.mxu0 %v3990_v2  ;;  %v4059_v2 = vld [vmem:[%s5533_s1 + $0x330] sm:$0xff] }
  0x3b   :  { %512 = vmatpush.bf16.msrb.mxu1 %v3998_v3  ;;  %v4067_v3 = vld [vmem:[%s5533_s1 + $0x370] sm:$0xff] }
  0x3c   :  { %940 = vmatpush.bf16.msrb.mxu2 %v4006_v4  ;;  %v4075_v4 = vld [vmem:[%s5533_s1 + $0x3b0] sm:$0xff] }
  0x3d   :  { %953 = vmatpush.bf16.msrb.mxu3 %v4014_v5  ;;  %v4083_v5 = vld [vmem:[%s5533_s1 + $0x3f0] sm:$0xff] }
  0x3e   :  { %500 = vmatpush.bf16.msrb.mxu0 %v3989_v8  ;;  %v4074_v8 = vld [vmem:[%s5533_s1 + $0x3a8] sm:$0xff] }
  0x3f   :  { %513 = vmatpush.bf16.msrb.mxu1 %v3997_v9  ;;  %v4082_v9 = vld [vmem:[%s5533_s1 + $0x3e8] sm:$0xff] }
  0x40   :  { %941 = vmatpush.bf16.msrb.mxu2 %v4005_v12  ;;  %v4073_v12 = vld [vmem:[%s5533_s1 + $0x3a0] sm:$0xff] }
  0x41   :  { %954 = vmatpush.bf16.msrb.mxu3 %v4013_v13  ;;  %501 = vmatmul.bf16.vlgmr.msrb.gmra.mxu0 %v145_v21  ;;  %v4081_v13 = vld [vmem:[%s5533_s1 + $0x3e0] sm:$0xff]  ;;  %v4079_v21 = vld [vmem:[%s5533_s1 + $0x3d0] sm:$0xff] }
  0x42   :  { %960 = vmatpush.bf16.msra.mxu0 %v4028_v16  ;;  %514 = vmatmul.bf16.vlgmr.msrb.gmra.mxu1 %v146_v23  ;;  %v4072_v16 = vld [vmem:[%s5533_s1 + $0x398] sm:$0xff]  ;;  %v4062_v23 = vld [vmem:[%s5533_s1 + $0x348] sm:$0xff] }
  0x43   :  { %973 = vmatpush.bf16.msra.mxu1 %v4036_v17  ;;  %942 = vmatmul.bf16.vlgmr.msrb.gmra.mxu2 %v634_v20  ;;  %v4080_v17 = vld [vmem:[%s5533_s1 + $0x3d8] sm:$0xff]  ;;  %v4071_v20 = vld [vmem:[%s5533_s1 + $0x390] sm:$0xff] }
  0x44   :  { %986 = vmatpush.bf16.msra.mxu2 %v4044_v18  ;;  %955 = vmatmul.bf16.vlgmr.msrb.gmra.mxu3 %v635_v22  ;;  %v4055_v18 = vld [vmem:[%s5533_s1 + $0x310] sm:$0xff]  ;;  %v4054_v22 = vld [vmem:[%s5533_s1 + $0x308] sm:$0xff] }
  0x45   :  { %999 = vmatpush.bf16.msra.mxu3 %v4052_v19  ;;  %v4063_v19 = vld [vmem:[%s5533_s1 + $0x350] sm:$0xff] }
  0x46   :  { %961 = vmatpush.bf16.msra.mxu0 %v4027_v24  ;;  %v3432_v24 = vld [vmem:[%s5534_s0 + $0x30] sm:$0xff] }
  0x47   :  { %974 = vmatpush.bf16.msra.mxu1 %v4035_v25  ;;  %v4070_v25 = vld [vmem:[%s5533_s1 + $0x388] sm:$0xff] }
  0x48   :  { %987 = vmatpush.bf16.msra.mxu2 %v4043_v26  ;;  %v1121_v26 = vunpack.c.l.b16 %v3432_v24 }
  0x49   :  { %1000 = vmatpush.bf16.msra.mxu3 %v4051_v27  ;;  %v4078_v27 = vld [vmem:[%s5533_s1 + $0x3c8] sm:$0xff] }
  0x4a   :  { %962 = vmatpush.bf16.msra.mxu0 %v4026_v28  ;;  %v1122_v28 = vunpack.c.h.b16 %v3432_v24 }
  0x4b   :  { %975 = vmatpush.bf16.msra.mxu1 %v4034_v29  ;;  %v4053_v29 = vld [vmem:[%s5533_s1 + $0x300] sm:$0xff] }
  0x4c   :  { %988 = vmatpush.bf16.msra.mxu2 %v4042_v30  ;;  %v4061_v30 = vld [vmem:[%s5533_s1 + $0x340] sm:$0xff] }
  0x4d   :  { %1001 = vmatpush.bf16.msra.mxu3 %v4050_v31  ;;  %v3433_v31 = vld [vmem:[%s5534_s0 + $0x38] sm:$0xff] }
  0x4e   :  { %963 = vmatpush.bf16.msra.mxu0 %v4025_v32  ;;  %v4092_v32 = vld [vmem:[%s5533_s1 + $0x438] sm:$0xff] }
  0x4f   :  { %976 = vmatpush.bf16.msra.mxu1 %v4033_v33  ;;  %v4100_v33 = vld [vmem:[%s5533_s1 + $0x478] sm:$0xff] }
  0x50   :  { %989 = vmatpush.bf16.msra.mxu2 %v4041_v34  ;;  %v1127_v34 = vpack.c.b16 %v1121_v26, %v1121_v26 }
  0x51   :  { %1002 = vmatpush.bf16.msra.mxu3 %v4049_v35  ;;  %v1128_v35 = vpack.c.b16 %v1122_v28, %v1122_v28 }
  0x52   :  { %964 = vmatpush.bf16.msra.mxu0 %v4024_v36  ;;  %v1123_v36 = vunpack.c.l.b16 %v3433_v31 }
  0x53   :  { %977 = vmatpush.bf16.msra.mxu1 %v4032_v37  ;;  %v1124_v37 = vunpack.c.h.b16 %v3433_v31 }
  0x54   :  { %990 = vmatpush.bf16.msra.mxu2 %v4040_v38  ;;  %v4069_v38 = vld [vmem:[%s5533_s1 + $0x380] sm:$0xff] }
  0x55   :  { %1003 = vmatpush.bf16.msra.mxu3 %v4048_v39  ;;  %v4077_v39 = vld [vmem:[%s5533_s1 + $0x3c0] sm:$0xff] }
  0x56   :  { %965 = vmatpush.bf16.msra.mxu0 %v4023_v40  ;;  %v4487_v40 = vld [vmem:[%s5536_s5 + $0x18] sm:$0xff]  }
  0x57   :  { %978 = vmatpush.bf16.msra.mxu1 %v4031_v41  ;;  %v4091_v41 = vld [vmem:[%s5533_s1 + $0x430] sm:$0xff] }
  0x58   :  { %991 = vmatpush.bf16.msra.mxu2 %v4039_v42  ;;  %v4099_v42 = vld [vmem:[%s5533_s1 + $0x470] sm:$0xff] }
  0x59   :  { %1004 = vmatpush.bf16.msra.mxu3 %v4047_v43  ;;  %v4116_v43 = vunpack.c.h.bf16 %v4487_v40 }
  0x5a   :  { %966 = vmatpush.bf16.msra.mxu0 %v4022_v44  ;;  %v1129_v44 = vpack.c.b16 %v1123_v36, %v1123_v36 }
  0x5b   :  { %979 = vmatpush.bf16.msra.mxu1 %v4030_v45  ;;  %v1130_v45 = vpack.c.b16 %v1124_v37, %v1124_v37 }
  0x5c   :  { %992 = vmatpush.bf16.msra.mxu2 %v4038_v47  ;;  %v4115_v47 = vunpack.c.l.bf16 %v4487_v40  ;;  %v4499_v40 = vld [vmem:[%s5536_s5 + $0x38] sm:$0xff]  }
  0x5d   :  { %1005 = vmatpush.bf16.msra.mxu3 %v4046_v48  ;;  %v4090_v48 = vld [vmem:[%s5533_s1 + $0x428] sm:$0xff] }
  0x5e   :  { %967 = vmatpush.bf16.msra.mxu0 %v4021_v52  ;;  %v4111_v52 = vunpack.c.l.bf16 %v4486_v46 }
  0x5f   :  { %980 = vmatpush.bf16.msra.mxu1 %v4029_v53  ;;  %v4089_v53 = vld [vmem:[%s5533_s1 + $0x420] sm:$0xff] }
  0x60   :  { %993 = vmatpush.bf16.msra.mxu2 %v4037_v56  ;;  %v4102_v56 = vld [vmem:[%s5536_s5] sm:$0xff]  }
  0x61   :  { %1006 = vmatpush.bf16.msra.mxu3 %v4045_v57  ;;  %968 = vmatmul.bf16.vlgmr.msra.gmra.mxu0 %v636_v60  ;;  %v4107_v57 = vunpack.c.l.bf16 %v4485_v51  ;;  %v4104_v60 = vunpack.c.h.bf16 %v4102_v56 }
  0x62   :  { %1427 = vmatpush.bf16.msrb.mxu0 %v4060_v58  ;;  %981 = vmatmul.bf16.vlgmr.msra.gmra.mxu1 %v637_v61  ;;  %v4088_v58 = vld [vmem:[%s5533_s1 + $0x418] sm:$0xff]  ;;  %v4103_v61 = vunpack.c.l.bf16 %v4102_v56 }
  0x63   :  { %1440 = vmatpush.bf16.msrb.mxu1 %v4068_v59  ;;  %994 = vmatmul.bf16.vlgmr.msra.gmra.mxu2 %v638_v62  ;;  %v4096_v59 = vld [vmem:[%s5533_s1 + $0x458] sm:$0xff] }
  0x64   :  { %1007 = vmatmul.bf16.vlgmr.msra.gmra.mxu3 %v639_v63  ;;  %1453 = vmatpush.bf16.msrb.mxu2 %v4076_v0  ;;  %v4491_v62 = vld [vmem:[%s5537_s4 + $0x38] sm:$0xff]   ;;  %v4087_v63 = vld [vmem:[%s5533_s1 + $0x410] sm:$0xff] }
  0x65   :  { %1466 = vmatpush.bf16.msrb.mxu3 %v4084_v1  ;;  %v4095_v0 = vld [vmem:[%s5533_s1 + $0x450] sm:$0xff]  ;;  %v4132_v1 = vunpack.c.h.bf16 %v4491_v62 }
  0x66   :  { %1428 = vmatpush.bf16.msrb.mxu0 %v4059_v2  ;;  %v4490_v2 = vld [vmem:[%s5537_s4 + $0x30] sm:$0xff]  }
  0x67   :  { %1441 = vmatpush.bf16.msrb.mxu1 %v4067_v3  ;;  %v4131_v3 = vunpack.c.l.bf16 %v4491_v62 }
  0x68   :  { %1454 = vmatpush.bf16.msrb.mxu2 %v4075_v4  ;;  %v4086_v4 = vld [vmem:[%s5533_s1 + $0x408] sm:$0xff] }
  0x69   :  { %1467 = vmatpush.bf16.msrb.mxu3 %v4083_v5  ;;  %v4094_v5 = vld [vmem:[%s5533_s1 + $0x448] sm:$0xff] }
  0x6a   :  { %1429 = vmatpush.bf16.msrb.mxu0 %v4058_v6  ;;  %v3434_v6 = vld [vmem:[%s5534_s0 + $0x40] sm:$0xff] }
  0x6b   :  { %1442 = vmatpush.bf16.msrb.mxu1 %v4066_v7  ;;  %v4128_v7 = vunpack.c.h.bf16 %v4490_v2 }
  0x6c   :  { %1455 = vmatpush.bf16.msrb.mxu2 %v4074_v8  ;;  %v4502_v8 = vld [vmem:[%s5537_s4 + $0x18] sm:$0xff]  }
  0x6d   :  { %1468 = vmatpush.bf16.msrb.mxu3 %v4082_v9  ;;  %v4489_v9 = vld [vmem:[%s5537_s4 + $0x28] sm:$0xff]  }
  0x6e   :  { %1430 = vmatpush.bf16.msrb.mxu0 %v4057_v10  ;;  %v1125_v10 = vunpack.c.l.b16 %v3434_v6 }
  0x6f   :  { %1443 = vmatpush.bf16.msrb.mxu1 %v4065_v11  ;;  %v1126_v11 = vunpack.c.h.b16 %v3434_v6 }
  0x70   :  { %1456 = vmatpush.bf16.msrb.mxu2 %v4073_v12  ;;  %v4127_v12 = vunpack.c.l.bf16 %v4490_v2 }
  0x71   :  { %1469 = vmatpush.bf16.msrb.mxu3 %v4081_v13  ;;  %v4085_v13 = vld [vmem:[%s5533_s1 + $0x400] sm:$0xff] }
  0x72   :  { %1431 = vmatpush.bf16.msrb.mxu0 %v4056_v14  ;;  %v4093_v14 = vld [vmem:[%s5533_s1 + $0x440] sm:$0xff] }
  0x73   :  { %1444 = vmatpush.bf16.msrb.mxu1 %v4064_v15  ;;  %v4180_v15 = vunpack.c.h.bf16 %v4502_v8 }
  0x74   :  { %1457 = vmatpush.bf16.msrb.mxu2 %v4072_v16  ;;  %v4124_v16 = vunpack.c.h.bf16 %v4489_v9 }
  0x75   :  { %1470 = vmatpush.bf16.msrb.mxu3 %v4080_v17  ;;  %v1131_v17 = vpack.c.b16 %v1125_v10, %v1125_v10 }
  0x76   :  { %1432 = vmatpush.bf16.msrb.mxu0 %v4055_v18  ;;  %v1132_v18 = vpack.c.b16 %v1126_v11, %v1126_v11 }
  0x77   :  { %1445 = vmatpush.bf16.msrb.mxu1 %v4063_v19  ;;  %v4501_v19 = vld [vmem:[%s5537_s4 + $0x10] sm:$0xff]  }
  0x78   :  { %1458 = vmatpush.bf16.msrb.mxu2 %v4071_v20  ;;  %v4179_v20 = vunpack.c.l.bf16 %v4502_v8 }
  0x79   :  { %1471 = vmatpush.bf16.msrb.mxu3 %v4079_v21  ;;  %v4176_v21 = vunpack.c.h.bf16 %v4501_v19 }
  0x7a   :  { %1433 = vmatpush.bf16.msrb.mxu0 %v4054_v22  ;;  %v4500_v22 = vld [vmem:[%s5537_s4 + $0x8] sm:$0xff]  }
  0x7b   :  { %1446 = vmatpush.bf16.msrb.mxu1 %v4062_v23  ;;  %v4175_v23 = vunpack.c.l.bf16 %v4501_v19  ;;  %v4172_v24 = vunpack.c.h.bf16 %v4500_v22  ;;  %v4171_v26 = vunpack.c.l.bf16 %v4500_v22 }
  0x7c   :  { %1459 = vmatpush.bf16.msrb.mxu2 %v4070_v25  ;;  %v4123_v25 = vunpack.c.l.bf16 %v4489_v9 }
  0x7d   :  { %1472 = vmatpush.bf16.msrb.mxu3 %v4078_v27 }
  0x7e   :  { %1434 = vmatpush.bf16.msrb.mxu0 %v4053_v29  ;;  %v4488_v29 = vld [vmem:[%s5537_s4 + $0x20] sm:$0xff]  }
  0x7f   :  { %1447 = vmatpush.bf16.msrb.mxu1 %v4061_v30  ;;  %v4166_v30 = vld [vmem:[%s5537_s4] sm:$0xff]   ;;  %v4120_v31 = vunpack.c.h.bf16 %v4488_v29 }
  0x80   :  { %1460 = vmatpush.bf16.msrb.mxu2 %v4069_v38 }
  0x81   :  { %1435 = vmatmul.bf16.vlgmr.msrb.gmra.mxu0 %v1127_v34  ;;  %1473 = vmatpush.bf16.msrb.mxu3 %v4077_v39  ;;  %v4167_v34 = vunpack.c.l.bf16 %v4166_v30  ;;  %v4582_v39 = vld [vmem:[%s5535_s2] ss:$0 sm:$0xff] }
  0x82   :  { %1479 = vmatpush.bf16.msra.mxu0 %v4092_v32  ;;  %1448 = vmatmul.bf16.vlgmr.msrb.gmra.mxu1 %v1128_v35  ;;  %v4168_v32 = vunpack.c.h.bf16 %v4166_v30 }
  0x83   :  { %1492 = vmatpush.bf16.msra.mxu1 %v4100_v33  ;;  %1461 = vmatmul.bf16.vlgmr.msrb.gmra.mxu2 %v1129_v44  ;;  %v4119_v33 = vunpack.c.l.bf16 %v4488_v29 }
  0x84   :  { %1537 = vmatpush.msra.mxu2 %v4116_v43  ;;  %1474 = vmatmul.bf16.vlgmr.msrb.gmra.mxu3 %v1130_v45  ;;  %v4163_v43 = vunpack.c.l.bf16 %v4499_v40 }
  0x86   :  { %1480 = vmatpush.bf16.msra.mxu0 %v4091_v41  ;;  %1538 = vmatpush.msra.mxu2 %v4115_v47 }
  0x87   :  { %1493 = vmatpush.bf16.msra.mxu1 %v4099_v42  ;;  %v4164_v42 = vunpack.c.h.bf16 %v4499_v40  ;;  %v4510_v40 = vld [vmem:[%s5536_s5 + $0x58] sm:$0xff]  }
  0x88   :  { %1539 = vmatpush.msra.mxu2 %v4112_v50 }
  0x8a   :  { %1481 = vmatpush.bf16.msra.mxu0 %v4090_v48  ;;  %1540 = vmatpush.msra.mxu2 %v4111_v52  ;;  %v4498_v48 = vld [vmem:[%s5536_s5 + $0x30] sm:$0xff]   ;;  %v4497_v52 = vld [vmem:[%s5536_s5 + $0x28] sm:$0xff]  }
  0x8b   :  { %1494 = vmatpush.bf16.msra.mxu1 %v4098_v49  ;;  %v4160_v49 = vunpack.c.h.bf16 %v4498_v48  ;;  %v4159_v51 = vunpack.c.l.bf16 %v4498_v48 }
  0x8c   :  { %1541 = vmatpush.msra.mxu2 %v4108_v55 }
  0x8e   :  { %1482 = vmatpush.bf16.msra.mxu0 %v4089_v53  ;;  %1542 = vmatpush.msra.mxu2 %v4107_v57  ;;  %v4155_v57 = vunpack.c.l.bf16 %v4497_v52 }
  0x8f   :  { %1495 = vmatpush.bf16.msra.mxu1 %v4097_v54  ;;  %v4156_v54 = vunpack.c.h.bf16 %v4497_v52  ;;  %v4495_v52 = vld [vmem:[%s5537_s4 + $0x78] sm:$0xff]  }
  0x90   :  { %1543 = vmatpush.msra.mxu2 %v4104_v60 }
  0x92   :  { %1483 = vmatpush.bf16.msra.mxu0 %v4088_v58  ;;  %1544 = vmatpush.msra.mxu2 %v4103_v61 }
  0x93   :  { %1496 = vmatpush.bf16.msra.mxu1 %v4096_v59  ;;  %v4496_v59 = vld [vmem:[%s5536_s5 + $0x20] sm:$0xff]  }
  0x94   :  { %1603 = vmatpush.msrb.mxu2 %v4132_v1  ;;  %v4152_v60 = vunpack.c.h.bf16 %v4496_v59  ;;  %v4151_v62 = vunpack.c.l.bf16 %v4496_v59 }
  0x96   :  { %1484 = vmatpush.bf16.msra.mxu0 %v4087_v63  ;;  %1604 = vmatpush.msrb.mxu2 %v4131_v3 }
  0x97   :  { %1497 = vmatpush.bf16.msra.mxu1 %v4095_v0 }
  0x98   :  { %1605 = vmatpush.msrb.mxu2 %v4128_v7 }
  0x9a   :  { %1485 = vmatpush.bf16.msra.mxu0 %v4086_v4  ;;  %1606 = vmatpush.msrb.mxu2 %v4127_v12  ;;  %v4583_v4 = vld [vmem:[%s5535_s2 + $0x1] ss:$0 sm:$0xff] }
  0x9b   :  { %1498 = vmatpush.bf16.msra.mxu1 %v4094_v5 }
  0x9c   :  { %1607 = vmatpush.msrb.mxu2 %v4124_v16 }
  0x9e   :  { %1486 = vmatpush.bf16.msra.mxu0 %v4085_v13  ;;  %v450_v27 = vpop.f32.mrf.mxu0  ;;  %1608 = vmatpush.msrb.mxu2 %v4123_v25 }
  0x9f   :  { %1499 = vmatpush.bf16.msra.mxu1 %v4093_v14  ;;  %v463_v28 = vpop.f32.mrf.mxu1  ;;  %v451_v44 = vadd.f32 %v4582_v39, %v450_v27 }
  0xa0   :  { %1609 = vmatpush.msrb.mxu2 %v4120_v31 }
  0xa1   :  { %1487 = vmatmul.bf16.vlgmr.msra.gmra.mxu0 %v1131_v17  ;;  %v464_v46 = vadd.f32 %v463_v28, %v451_v44  ;;  %v5159_v17 = vld [vmem:[%s5539_s3 + $0x8] sm:$0xff] }
  0xa2   :  { %1500 = vmatmul.bf16.vlgmr.msra.gmra.mxu1 %v1132_v18  ;;  %1610 = vmatpush.msrb.mxu2 %v4119_v33 }
  0xa3   :  { %1778 = vmatpush.msrb.mxu1 %v4180_v15  ;;  %1715 = vmatpush.msrb.mxu0 %v4164_v42  ;;  %v4212_v42 = vunpack.c.h.bf16 %v4510_v40 }
  0xa5   :  { %1779 = vmatpush.msrb.mxu1 %v4179_v20  ;;  %1716 = vmatpush.msrb.mxu0 %v4163_v43  ;;  %v4211_v43 = vunpack.c.l.bf16 %v4510_v40 }
  0xa6   :  { %v476_v35 = vpop.f32.mrf.mxu2  ;;  %v452_v37 = vpop.f32.mrf.mxu0 }
  0xa7   :  { %1780 = vmatpush.msrb.mxu1 %v4176_v21  ;;  %v489_v36 = vpop.f32.mrf.mxu3  ;;  %v465_v38 = vpop.f32.mrf.mxu1  ;;  %v477_v47 = vadd.f32 %v476_v35, %v464_v46  ;;  %1717 = vmatpush.msrb.mxu0 %v4160_v49  ;;  %v5172_v37 = vld [vmem:[%s5539_s3 + $0x18] sm:$0xff]  ;;  %v4507_v49 = vld [vmem:[%s5536_s5 + $0x40] sm:$0xff]  }
  0xa9   :  { %1781 = vmatpush.msrb.mxu1 %v4175_v23  ;;  %v490_v50 = vadd.f32 %v489_v36, %v477_v47  ;;  %1718 = vmatpush.msrb.mxu0 %v4159_v51  ;;  %v4199_v51 = vunpack.c.l.bf16 %v4507_v49 }
  0xab   :  { %1782 = vmatpush.msrb.mxu1 %v4172_v24  ;;  %1719 = vmatpush.msrb.mxu0 %v4156_v54  ;;  %v4584_v24 = vld [vmem:[%s5535_s2 + $0x2] ss:$0 sm:$0xff]  ;;  %v4148_v54 = vunpack.c.h.bf16 %v4495_v52 }
  0xad   :  { %1783 = vmatpush.msrb.mxu1 %v4171_v26  ;;  %1720 = vmatpush.msrb.mxu0 %v4155_v57  ;;  %v4493_v57 = vld [vmem:[%s5537_s4 + $0x68] sm:$0xff]  }
  0xae   :  { %v478_v41 = vpop.f32.mrf.mxu2  ;;  %v4140_v59 = vunpack.c.h.bf16 %v4493_v57 }
  0xaf   :  { %1784 = vmatpush.msrb.mxu1 %v4168_v32  ;;  %v491_v45 = vpop.f32.mrf.mxu3  ;;  %1721 = vmatpush.msrb.mxu0 %v4152_v60  ;;  %v4509_v41 = vld [vmem:[%s5536_s5 + $0x50] sm:$0xff]   ;;  %v4492_v60 = vld [vmem:[%s5537_s4 + $0x60] sm:$0xff]  }
  0xb0   :  { %v4208_v44 = vunpack.c.h.bf16 %v4509_v41  ;;  %v4508_v45 = vld [vmem:[%s5536_s5 + $0x48] sm:$0xff]   ;;  %v4207_v46 = vunpack.c.l.bf16 %v4509_v41  ;;  %v4585_v41 = vld [vmem:[%s5538_s6] ss:$0 sm:$0xff] }
  0xb1   :  { %1785 = vmatpush.msrb.mxu1 %v4167_v34  ;;  %1722 = vmatpush.msrb.mxu0 %v4151_v62  ;;  %v4204_v47 = vunpack.c.h.bf16 %v4508_v45  ;;  %v4203_v48 = vunpack.c.l.bf16 %v4508_v45  ;;  %v4136_v62 = vunpack.c.h.bf16 %v4492_v60 }
  0xb3   :  { %1890 = vmatpush.msra.mxu0 %v4212_v42 }
  0xb5   :  { %1891 = vmatpush.msra.mxu0 %v4211_v43 }
  0xb7   :  { %1892 = vmatpush.msra.mxu0 %v4208_v44 }
  0xb9   :  { %1893 = vmatpush.msra.mxu0 %v4207_v46 }
  0xbb   :  { %1894 = vmatpush.msra.mxu0 %v4204_v47 }
  0xbd   :  { %1895 = vmatpush.msra.mxu0 %v4203_v48  ;;  %v4512_v48 = vld [vmem:[%s5537_s4 + $0x48] sm:$0xff]  }
  0xbe   :  { %v502_v53 = vpop.f32.mrf.mxu0 }
  0xbf   :  { %v503_v55 = vadd.f32 %v502_v53, %v490_v50  ;;  %v515_v56 = vpop.f32.mrf.mxu1  ;;  %v4200_v50 = vunpack.c.h.bf16 %v4507_v49  ;;  %v4494_v53 = vld [vmem:[%s5537_s4 + $0x70] sm:$0xff]   ;;  %v4518_v49 = vld [vmem:[%s5537_s4 + $0xb8] sm:$0xff]  }
  0xc1   :  { %v516_v58 = vadd.f32 %v515_v56, %v503_v55  ;;  %1896 = vmatpush.msra.mxu0 %v4200_v50  ;;  %v4147_v55 = vunpack.c.l.bf16 %v4495_v52  ;;  %v4144_v56 = vunpack.c.h.bf16 %v4494_v53  ;;  %v4220_v50 = vunpack.c.h.bf16 %v4512_v48 }
  0xc2   :  { %v4219_v52 = vunpack.c.l.bf16 %v4512_v48 }
  0xc3   :  { %3724 = vmatmul.msk.f32.vlgmr.msra.gmra.mxu2 %vm1525_vm0, %v516_v58  ;;  %1922 = vmatpush.msra.mxu1 %v516_v58 }
  0xc4   :  { %1746 = vmatpush.msra.mxu2 %v516_v58  ;;  %1897 = vmatpush.msra.mxu0 %v4199_v51  ;;  %v4143_v58 = vunpack.c.l.bf16 %v4494_v53  ;;  %v4244_v51 = vunpack.c.h.bf16 %v4518_v49  ;;  %v4243_v53 = vunpack.c.l.bf16 %v4518_v49  ;;  %v4544_v49 = vld [vmem:[%s5536_s5 + $0xa8] sm:$0xff]  }
  0xc6   :  { %v943_v61 = vpop.f32.mrf.mxu2  ;;  %v504_v0 = vpop.f32.mrf.mxu0 }
  0xc7   :  { %v956_v63 = vpop.f32.mrf.mxu3  ;;  %v517_v1 = vpop.f32.mrf.mxu1  ;;  %v944_v5 = vadd.f32 %v4583_v4, %v943_v61  ;;  %v4139_v61 = vunpack.c.l.bf16 %v4493_v57  ;;  %v5205_v0 = vld [vmem:[%s5539_s3] sm:$0xff]  ;;  %v4506_v4 = vld [vmem:[%s5537_s4 + $0x98] sm:$0xff]  }
  0xc8   :  { %v5212_v1 = vld [vmem:[%s5539_s3 + $0x20] sm:$0xff] }
  0xc9   :  { %v957_v6 = vadd.f32 %v956_v63, %v944_v5  ;;  %v4196_v5 = vunpack.c.h.bf16 %v4506_v4 }
  0xce   :  { %v945_v2 = vpop.f32.mrf.mxu2 }
  0xcf   :  { %v958_v3 = vpop.f32.mrf.mxu3  ;;  %v4135_v2 = vunpack.c.l.bf16 %v4492_v60 }
  0xde   :  { %v969_v7 = vpop.f32.mrf.mxu0 }
  0xdf   :  { %v982_v8 = vpop.f32.mrf.mxu1  ;;  %v970_v9 = vadd.f32 %v969_v7, %v957_v6  ;;  %v4195_v6 = vunpack.c.l.bf16 %v4506_v4  ;;  %v4505_v7 = vld [vmem:[%s5537_s4 + $0x90] sm:$0xff]  }
  0xe1   :  { %v983_v10 = vadd.f32 %v982_v8, %v970_v9  ;;  %v4192_v8 = vunpack.c.h.bf16 %v4505_v7  ;;  %v4191_v9 = vunpack.c.l.bf16 %v4505_v7  ;;  %v4532_v7 = vld [vmem:[%s5536_s5 + $0x88] sm:$0xff]  }
  0xe6   :  { %v995_v11 = vpop.f32.mrf.mxu2  ;;  %v971_v14 = vpop.f32.mrf.mxu0 }
  0xe7   :  { %v1008_v12 = vpop.f32.mrf.mxu3  ;;  %v996_v13 = vadd.f32 %v995_v11, %v983_v10  ;;  %v984_v15 = vpop.f32.mrf.mxu1  ;;  %v4504_v10 = vld [vmem:[%s5537_s4 + $0x88] sm:$0xff]  }
  0xe8   :  { %v4188_v11 = vunpack.c.h.bf16 %v4504_v10 }
  0xe9   :  { %v5154_v16 = vadd.f32 %v1008_v12, %v996_v13  ;;  %v4187_v12 = vunpack.c.l.bf16 %v4504_v10  ;;  %v4503_v13 = vld [vmem:[%s5537_s4 + $0x80] sm:$0xff]  }
  0xea   :  { %v4184_v14 = vunpack.c.h.bf16 %v4503_v13  ;;  %v4183_v15 = vunpack.c.l.bf16 %v4503_v13 }
  0xeb   :  { %1570 = vmatpush.msra.mxu3 %v5154_v16  ;;  %3756 = vmatmul.msk.f32.vlgmr.msrb.gmra.mxu0 %vm1525_vm0, %v5154_v16 }
  0xec   :  { %3726 = vmatmul.msk.f32.vlgmr.msra.gmra.mxu3 %vm1551_vm1, %v5159_v17 }
  0xee   :  { %v997_v18 = vpop.f32.mrf.mxu2 }
  0xef   :  { %v1010_v19 = vpop.f32.mrf.mxu3 }
  0xf0   :  { %v4522_v19 = vld [vmem:[%s5536_s5 + $0x78] sm:$0xff]  }
  0xfe   :  { %v1436_v20 = vpop.f32.mrf.mxu0 }
  0xff   :  { %v1449_v21 = vpop.f32.mrf.mxu1  ;;  %v1437_v27 = vadd.f32 %v4584_v24, %v1436_v20  ;;  %v4521_v20 = vld [vmem:[%s5536_s5 + $0x70] sm:$0xff]   ;;  %v4520_v24 = vld [vmem:[%s5536_s5 + $0x68] sm:$0xff]  }
 0x101   :  { %v1450_v28 = vadd.f32 %v1449_v21, %v1437_v27  ;;  %v4260_v21 = vunpack.c.h.bf16 %v4522_v19  ;;  %v4252_v27 = vunpack.c.h.bf16 %v4520_v24 }
 0x103   :  { %2070 = vmatpush.msrb.mxu0 %v4260_v21 }
 0x106   :  { %v1438_v22 = vpop.f32.mrf.mxu0  ;;  %v1462_v25 = vpop.f32.mrf.mxu2 }
 0x107   :  { %v1451_v23 = vpop.f32.mrf.mxu1  ;;  %v1475_v26 = vpop.f32.mrf.mxu3  ;;  %v1463_v31 = vadd.f32 %v1462_v25, %v1450_v28  ;;  %v4259_v22 = vunpack.c.l.bf16 %v4522_v19  ;;  %v4255_v25 = vunpack.c.l.bf16 %v4521_v20  ;;  %v4586_v19 = vld [vmem:[%s5538_s6 + $0x1] ss:$0 sm:$0xff] }
 0x108   :  { %v4256_v23 = vunpack.c.h.bf16 %v4521_v20 }
 0x109   :  { %v1476_v32 = vadd.f32 %v1475_v26, %v1463_v31  ;;  %2071 = vmatpush.msrb.mxu0 %v4259_v22  ;;  %v4251_v31 = vunpack.c.l.bf16 %v4520_v24 }
 0x10b   :  { %2072 = vmatpush.msrb.mxu0 %v4256_v23 }
 0x10d   :  { %2073 = vmatpush.msrb.mxu0 %v4255_v25 }
 0x10e   :  { %v1464_v29 = vpop.f32.mrf.mxu2 }
 0x10f   :  { %v1477_v30 = vpop.f32.mrf.mxu3  ;;  %2074 = vmatpush.msrb.mxu0 %v4252_v27  ;;  %v5243_v29 = vld [vmem:[%s5539_s3 + $0x10] sm:$0xff] }
 0x111   :  { %2075 = vmatpush.msrb.mxu0 %v4251_v31  ;;  %v4546_v31 = vld [vmem:[%s5536_s5 + $0xb8] sm:$0xff]  }
 0x11e   :  { %v1488_v33 = vpop.f32.mrf.mxu0 }
 0x11f   :  { %v1501_v34 = vpop.f32.mrf.mxu1  ;;  %v1489_v35 = vadd.f32 %v1488_v33, %v1476_v32  ;;  %v4519_v32 = vld [vmem:[%s5536_s5 + $0x60] sm:$0xff]  }
 0x120   :  { %v4248_v33 = vunpack.c.h.bf16 %v4519_v32 }
 0x121   :  { %v1502_v36 = vadd.f32 %v1501_v34, %v1489_v35  ;;  %v4247_v34 = vunpack.c.l.bf16 %v4519_v32  ;;  %v4514_v35 = vld [vmem:[%s5537_s4 + $0x58] sm:$0xff]  }
 0x122   :  { %2076 = vmatpush.msrb.mxu0 %v4248_v33 }
 0x123   :  { %1636 = vmatpush.msrb.mxu3 %v1502_v36  ;;  %3779 = vmatmul.msk.f32.vlgmr.msra.gmra.mxu0 %vm1525_vm0, %v1502_v36 }
 0x124   :  { %3737 = vmatmul.msk.f32.vlgmr.msrb.gmra.mxu3 %vm1551_vm1, %v5172_v37  ;;  %2077 = vmatpush.msrb.mxu0 %v4247_v34  ;;  %v4356_v34 = vunpack.c.h.bf16 %v4546_v31 }
 0x125   :  { %1669 = vmatpush.msra.mxu3 %v4148_v54  ;;  %v4534_v54 = vld [vmem:[%s5536_s5 + $0x98] sm:$0xff]  }
 0x126   :  { %v1490_v38 = vpop.f32.mrf.mxu0  ;;  %v4308_v57 = vunpack.c.h.bf16 %v4534_v54 }
 0x127   :  { %v1503_v39 = vpop.f32.mrf.mxu1  ;;  %1670 = vmatpush.msra.mxu3 %v4147_v55  ;;  %v4228_v38 = vunpack.c.h.bf16 %v4514_v35  ;;  %v4511_v55 = vld [vmem:[%s5537_s4 + $0x40] sm:$0xff]  }
 0x128   :  { %v4227_v39 = vunpack.c.l.bf16 %v4514_v35  ;;  %2237 = vmatpush.msra.mxu0 %v4308_v57 }
 0x129   :  { %1671 = vmatpush.msra.mxu3 %v4144_v56  ;;  %v4517_v56 = vld [vmem:[%s5537_s4 + $0xb0] sm:$0xff]  }
 0x12a   :  { %v4240_v60 = vunpack.c.h.bf16 %v4517_v56 }
 0x12b   :  { %1672 = vmatpush.msra.mxu3 %v4143_v58  ;;  %v4307_v58 = vunpack.c.l.bf16 %v4534_v54 }
 0x12d   :  { %1673 = vmatpush.msra.mxu3 %v4140_v59  ;;  %v4216_v59 = vunpack.c.h.bf16 %v4511_v55  ;;  %2238 = vmatpush.msra.mxu0 %v4307_v58 }
 0x12f   :  { %1674 = vmatpush.msra.mxu3 %v4139_v61  ;;  %v4533_v61 = vld [vmem:[%s5536_s5 + $0x90] sm:$0xff]  }
 0x131   :  { %1675 = vmatpush.msra.mxu3 %v4136_v62  ;;  %v4215_v62 = vunpack.c.l.bf16 %v4511_v55  ;;  %v4587_v55 = vld [vmem:[%s5538_s6 + $0x2] ss:$0 sm:$0xff] }
 0x133   :  { %1676 = vmatpush.msra.mxu3 %v4135_v2  ;;  %v4304_v2 = vunpack.c.h.bf16 %v4533_v61 }
 0x135   :  { %1844 = vmatpush.msrb.mxu3 %v4196_v5  ;;  %v4303_v5 = vunpack.c.l.bf16 %v4533_v61  ;;  %2239 = vmatpush.msra.mxu0 %v4304_v2  ;;  %v4530_v2 = vld [vmem:[%s5537_s4 + $0x138] sm:$0xff]  }
 0x137   :  { %1845 = vmatpush.msrb.mxu3 %v4195_v6  ;;  %2240 = vmatpush.msra.mxu0 %v4303_v5  ;;  %v4291_v5 = vunpack.c.l.bf16 %v4530_v2 }
 0x139   :  { %1846 = vmatpush.msrb.mxu3 %v4192_v8  ;;  %v4300_v8 = vunpack.c.h.bf16 %v4532_v7 }
 0x13b   :  { %1847 = vmatpush.msrb.mxu3 %v4191_v9  ;;  %v4515_v9 = vld [vmem:[%s5537_s4 + $0xa0] sm:$0xff]   ;;  %2241 = vmatpush.msra.mxu0 %v4300_v8 }
 0x13c   :  { %v4232_v10 = vunpack.c.h.bf16 %v4515_v9  ;;  %v4231_v13 = vunpack.c.l.bf16 %v4515_v9 }
 0x13d   :  { %1848 = vmatpush.msrb.mxu3 %v4188_v11  ;;  %v4299_v11 = vunpack.c.l.bf16 %v4532_v7 }
 0x13f   :  { %1849 = vmatpush.msrb.mxu3 %v4187_v12  ;;  %v4531_v12 = vld [vmem:[%s5536_s5 + $0x80] sm:$0xff]   ;;  %2242 = vmatpush.msra.mxu0 %v4299_v11 }
 0x141   :  { %1850 = vmatpush.msrb.mxu3 %v4184_v14  ;;  %v4296_v14 = vunpack.c.h.bf16 %v4531_v12 }
 0x143   :  { %1851 = vmatpush.msrb.mxu3 %v4183_v15  ;;  %v4295_v15 = vunpack.c.l.bf16 %v4531_v12  ;;  %2243 = vmatpush.msra.mxu0 %v4296_v14  ;;  %v4527_v14 = vld [vmem:[%s5537_s4 + $0x120] sm:$0xff]  }
 0x145   :  { %2244 = vmatpush.msra.mxu0 %v4295_v15  ;;  %v4280_v15 = vunpack.c.h.bf16 %v4527_v14 }
 0x146   :  { %v1546_v18 = vpop.f32.mrf.mxu2 }
 0x147   :  { %v1547_v42 = vadd.f32 %v4585_v41, %v1546_v18 }
 0x168   :  { %v1724_v20 = vpop.f32.mrf.mxu0 }
 0x169   :  { %v1725_v22 = vadd.f32 %v4586_v19, %v1724_v20  ;;  %v4279_v19 = vunpack.c.l.bf16 %v4527_v14 }
 0x16f   :  { %v1572_v63 = vpop.f32.mrf.mxu3 }
 0x170   :  { %3735 = vmatmul.msk.f32.vlgmr.msrb.gmra.mxu2 %vm1525_vm0, %v1572_v63  ;;  %v4239_v63 = vunpack.c.l.bf16 %v4517_v56 }
 0x171   :  { %1811 = vmatpush.msrb.mxu2 %v1502_v36  ;;  %v4513_v36 = vld [vmem:[%s5537_s4 + $0x50] sm:$0xff]  }
 0x172   :  { %v4224_v40 = vunpack.c.h.bf16 %v4513_v36  ;;  %v4223_v47 = vunpack.c.l.bf16 %v4513_v36  ;;  %v4524_v36 = vld [vmem:[%s5537_s4 + $0xe8] sm:$0xff]  }
 0x173   :  { %v4267_v41 = vunpack.c.l.bf16 %v4524_v36 }
 0x178   :  { %3757 = vmatmul.msk.f32.vlgmr.msra.gmra.mxu2 %vm1551_vm1, %v5205_v0 }
 0x179   :  { %1955 = vmatpush.msra.mxu2 %v4228_v38 }
 0x17b   :  { %1956 = vmatpush.msra.mxu2 %v4227_v39  ;;  %v4268_v39 = vunpack.c.h.bf16 %v4524_v36 }
 0x17d   :  { %1957 = vmatpush.msra.mxu2 %v4224_v40  ;;  %v4355_v40 = vunpack.c.l.bf16 %v4546_v31 }
 0x17f   :  { %1958 = vmatpush.msra.mxu2 %v4223_v47 }
 0x180   :  { %3760 = vmatmul.msk.f32.vlgmr.msrb.gmra.mxu2 %vm1551_vm1, %v5212_v1 }
 0x181   :  { %1959 = vmatpush.msra.mxu2 %v4220_v50  ;;  %v4348_v50 = vunpack.c.h.bf16 %v4544_v49 }
 0x183   :  { %1960 = vmatpush.msra.mxu2 %v4219_v52  ;;  %v4543_v52 = vld [vmem:[%s5536_s5 + $0xa0] sm:$0xff]  }
 0x184   :  { %v4343_v54 = vunpack.c.l.bf16 %v4543_v52 }
 0x185   :  { %1961 = vmatpush.msra.mxu2 %v4216_v59 }
 0x187   :  { %1962 = vmatpush.msra.mxu2 %v4215_v62 }
 0x1a0   :  { %v1899_v56 = vpop.f32.mrf.mxu0 }
 0x1a1   :  { %v1900_v58 = vadd.f32 %v4587_v55, %v1899_v56 }
 0x1a7   :  { %v1638_v3 = vpop.f32.mrf.mxu3 }
 0x1a8   :  { %3746 = vmatmul.msk.f32.vlgmr.msra.gmra.mxu3 %vm1525_vm0, %v1638_v3  ;;  %v4516_v3 = vld [vmem:[%s5537_s4 + $0xa8] sm:$0xff]  }
 0x1a9   :  { %2021 = vmatpush.msra.mxu3 %v4244_v51  ;;  %v4236_v4 = vunpack.c.h.bf16 %v4516_v3  ;;  %v4235_v6 = vunpack.c.l.bf16 %v4516_v3  ;;  %v4347_v51 = vunpack.c.l.bf16 %v4544_v49  ;;  %v4529_v3 = vld [vmem:[%s5537_s4 + $0x130] sm:$0xff]   ;;  %v4547_v49 = vld [vmem:[%s5537_s4 + $0x100] sm:$0xff]  }
 0x1aa   :  { %v4288_v9 = vunpack.c.h.bf16 %v4529_v3  ;;  %v4287_v11 = vunpack.c.l.bf16 %v4529_v3  ;;  %v4556_v3 = vld [vmem:[%s5536_s5 + $0xc8] sm:$0xff]  }
 0x1ab   :  { %2022 = vmatpush.msra.mxu3 %v4243_v53  ;;  %v4344_v53 = vunpack.c.h.bf16 %v4543_v52  ;;  %v4554_v52 = vld [vmem:[%s5537_s4 + $0x178] sm:$0xff]  }
 0x1ac   :  { %v4387_v56 = vunpack.c.l.bf16 %v4554_v52 }
 0x1ad   :  { %2023 = vmatpush.msra.mxu3 %v4240_v60 }
 0x1af   :  { %2024 = vmatpush.msra.mxu3 %v4239_v63 }
 0x1b1   :  { %2025 = vmatpush.msra.mxu3 %v4236_v4  ;;  %v4292_v4 = vunpack.c.h.bf16 %v4530_v2 }
 0x1b3   :  { %2026 = vmatpush.msra.mxu3 %v4235_v6  ;;  %v4538_v6 = vld [vmem:[%s5537_s4 + $0xd8] sm:$0xff]  }
 0x1b4   :  { %v4324_v7 = vunpack.c.h.bf16 %v4538_v6  ;;  %v4323_v8 = vunpack.c.l.bf16 %v4538_v6  ;;  %v4551_v6 = vld [vmem:[%s5537_s4 + $0x160] sm:$0xff]  }
 0x1b5   :  { %2027 = vmatpush.msra.mxu3 %v4232_v10  ;;  %v4528_v10 = vld [vmem:[%s5537_s4 + $0x128] sm:$0xff]  }
 0x1b6   :  { %v4284_v12 = vunpack.c.h.bf16 %v4528_v10 }
 0x1b7   :  { %2028 = vmatpush.msra.mxu3 %v4231_v13  ;;  %v4283_v13 = vunpack.c.l.bf16 %v4528_v10  ;;  %v4376_v10 = vunpack.c.h.bf16 %v4551_v6 }
 0x1f3   :  { %v1612_v26 = vpop.f32.mrf.mxu2 }
 0x1f4   :  { %v1615_v43 = vadd.f32 %v1612_v26, %v1547_v42  ;;  %v4545_v42 = vld [vmem:[%s5536_s5 + $0xb0] sm:$0xff]  }
 0x1f5   :  { %v4351_v47 = vunpack.c.l.bf16 %v4545_v42 }
 0x1fb   :  { %v1748_v28 = vpop.f32.mrf.mxu2 }
 0x1fc   :  { %3758 = vmatmul.msk.f32.vlgmr.msrb.gmra.mxu1 %vm1525_vm0, %v1748_v28  ;;  %v4526_v28 = vld [vmem:[%s5537_s4 + $0xf8] sm:$0xff]  }
 0x1fd   :  { %1988 = vmatpush.msrb.mxu1 %v5154_v16  ;;  %v5254_v16 = vld [vmem:[%s5539_s3 + $0x28] sm:$0xff]  ;;  %v4276_v32 = vunpack.c.h.bf16 %v4526_v28  ;;  %v4275_v33 = vunpack.c.l.bf16 %v4526_v28 }
 0x1ff   :  { %2130 = vmatpush.msrb.mxu2 %v4276_v32  ;;  %v4540_v32 = vld [vmem:[%s5537_s4 + $0x148] sm:$0xff]  }
 0x200   :  { %v4331_v36 = vunpack.c.l.bf16 %v4540_v32 }
 0x201   :  { %2131 = vmatpush.msrb.mxu2 %v4275_v33  ;;  %v4550_v33 = vld [vmem:[%s5537_s4 + $0x118] sm:$0xff]  }
 0x203   :  { %v1813_v30 = vpop.f32.mrf.mxu2 }
 0x204   :  { %3769 = vmatmul.msk.f32.vlgmr.msrb.gmra.mxu3 %vm1525_vm0, %v1813_v30  ;;  %3781 = vmatmul.msk.f32.vlgmr.msra.gmra.mxu1 %vm1551_vm1, %v5243_v29  ;;  %v4525_v30 = vld [vmem:[%s5537_s4 + $0xf0] sm:$0xff]  }
 0x205   :  { %v4272_v35 = vunpack.c.h.bf16 %v4525_v30  ;;  %v4271_v38 = vunpack.c.l.bf16 %v4525_v30  ;;  %2191 = vmatpush.msrb.mxu3 %v4292_v4 }
 0x207   :  { %2132 = vmatpush.msrb.mxu2 %v4272_v35  ;;  %2192 = vmatpush.msrb.mxu3 %v4291_v5  ;;  %v4372_v35 = vunpack.c.h.bf16 %v4550_v33 }
 0x209   :  { %2133 = vmatpush.msrb.mxu2 %v4271_v38  ;;  %2193 = vmatpush.msrb.mxu3 %v4288_v9  ;;  %v4371_v38 = vunpack.c.l.bf16 %v4550_v33  ;;  %v4396_v9 = vunpack.c.h.bf16 %v4556_v3 }
 0x20b   :  { %2134 = vmatpush.msrb.mxu2 %v4268_v39  ;;  %2194 = vmatpush.msrb.mxu3 %v4287_v11  ;;  %v4539_v39 = vld [vmem:[%s5537_s4 + $0x140] sm:$0xff]   ;;  %v4375_v11 = vunpack.c.l.bf16 %v4551_v6  ;;  %v4565_v6 = vld [vmem:[%s5537_s4 + $0x1f0] sm:$0xff]  }
 0x20c   :  { %3792 = vmatmul.msk.f32.vlgmr.msrb.gmra.mxu1 %vm1551_vm1, %v5254_v16 }
 0x20d   :  { %2135 = vmatpush.msrb.mxu2 %v4267_v41  ;;  %2195 = vmatpush.msrb.mxu3 %v4284_v12  ;;  %v4328_v41 = vunpack.c.h.bf16 %v4539_v39 }
 0x20f   :  { %2196 = vmatpush.msrb.mxu3 %v4283_v13 }
 0x211   :  { %2197 = vmatpush.msrb.mxu3 %v4280_v15  ;;  %v4555_v15 = vld [vmem:[%s5536_s5 + $0xc0] sm:$0xff]  }
 0x213   :  { %2198 = vmatpush.msrb.mxu3 %v4279_v19  ;;  %v4391_v19 = vunpack.c.l.bf16 %v4555_v15 }
 0x22b   :  { %v1678_v44 = vpop.f32.mrf.mxu3 }
 0x22c   :  { %v1681_v45 = vadd.f32 %v1678_v44, %v1615_v43  ;;  %v4352_v43 = vunpack.c.h.bf16 %v4545_v42  ;;  %v4523_v44 = vld [vmem:[%s5537_s4 + $0xe0] sm:$0xff]  }
 0x22d   :  { %v4263_v48 = vunpack.c.l.bf16 %v4523_v44 }
 0x22e   :  { %v5267_v46 = vmax.f32 %v1681_v45, 0.0  ;;  %v4264_v45 = vunpack.c.h.bf16 %v4523_v44 }
 0x230   :  { %3811 = vmatmul.msk.f32.vlgmr.msrb.gmra.mxu0 %vm1525_vm0, %v5267_v46  ;;  %2136 = vmatpush.msrb.mxu2 %v4264_v45  ;;  %v4548_v45 = vld [vmem:[%s5537_s4 + $0x108] sm:$0xff]  }
 0x231   :  { %2404 = vmatpush.msrb.mxu0 %v4356_v34  ;;  %v4332_v34 = vunpack.c.h.bf16 %v4540_v32 }
 0x232   :  { %2137 = vmatpush.msrb.mxu2 %v4263_v48  ;;  %v4363_v48 = vunpack.c.l.bf16 %v4548_v45 }
 0x233   :  { %2405 = vmatpush.msrb.mxu0 %v4355_v40  ;;  %v4549_v40 = vld [vmem:[%s5537_s4 + $0x110] sm:$0xff]  }
 0x234   :  { %v4368_v42 = vunpack.c.h.bf16 %v4549_v40  ;;  %v4367_v44 = vunpack.c.l.bf16 %v4549_v40  ;;  %v4589_v40 = vld [vmem:[%s5538_s6 + $0x4] ss:$0 sm:$0xff] }
 0x235   :  { %2406 = vmatpush.msrb.mxu0 %v4352_v43  ;;  %v4327_v43 = vunpack.c.l.bf16 %v4539_v39 }
 0x237   :  { %2407 = vmatpush.msrb.mxu0 %v4351_v47  ;;  %v4364_v47 = vunpack.c.h.bf16 %v4548_v45 }
 0x239   :  { %2408 = vmatpush.msrb.mxu0 %v4348_v50  ;;  %v4360_v50 = vunpack.c.h.bf16 %v4547_v49 }
 0x23b   :  { %2409 = vmatpush.msrb.mxu0 %v4347_v51  ;;  %v4359_v51 = vunpack.c.l.bf16 %v4547_v49  ;;  %v4590_v49 = vld [vmem:[%s5538_s6 + $0x5] ss:$0 sm:$0xff] }
 0x23d   :  { %2410 = vmatpush.msrb.mxu0 %v4344_v53  ;;  %v4388_v53 = vunpack.c.h.bf16 %v4554_v52 }
 0x23f   :  { %2411 = vmatpush.msrb.mxu0 %v4343_v54  ;;  %v4553_v54 = vld [vmem:[%s5537_s4 + $0x170] sm:$0xff]  }
 0x279   :  { %v1787_v18 = vpop.f32.mrf.mxu1 }
 0x27a   :  { %v1790_v23 = vadd.f32 %v1787_v18, %v1725_v22 }
 0x281   :  { %v1924_v21 = vpop.f32.mrf.mxu1 }
 0x282   :  { %3790 = vmatmul.msk.f32.vlgmr.msra.gmra.mxu2 %vm1525_vm0, %v1924_v21 }
 0x283   :  { %2297 = vmatpush.msra.mxu2 %v4324_v7 }
 0x285   :  { %2298 = vmatpush.msra.mxu2 %v4323_v8 }
 0x287   :  { %v1853_v24 = vpop.f32.mrf.mxu3 }
 0x288   :  { %v1856_v25 = vadd.f32 %v1853_v24, %v1790_v23 }
 0x289   :  { %v1990_v26 = vpop.f32.mrf.mxu1 }
 0x28a   :  { %v5305_v27 = vmax.f32 %v1856_v25, 0.0  ;;  %3801 = vmatmul.msk.f32.vlgmr.msra.gmra.mxu3 %vm1525_vm0, %v1990_v26  ;;  %v4535_v25 = vld [vmem:[%s5537_s4 + $0xc0] sm:$0xff]   ;;  %v4541_v26 = vld [vmem:[%s5537_s4 + $0x150] sm:$0xff]  }
 0x28b   :  { %v4336_v28 = vunpack.c.h.bf16 %v4541_v26  ;;  %v4311_v30 = vunpack.c.l.bf16 %v4535_v25  ;;  %v4335_v31 = vunpack.c.l.bf16 %v4541_v26 }
 0x28c   :  { %2097 = vmatpush.msra.mxu1 %v5305_v27  ;;  %3841 = vmatmul.msk.f32.vlgmr.msra.gmra.mxu0 %vm1525_vm0, %v5305_v27 }
 0x28d   :  { %3812 = vmatmul.msk.f32.vlgmr.msra.gmra.mxu1 %vm1551_vm1, %v5159_v17 }
 0x2ad   :  { %v2079_v32 = vpop.f32.mrf.mxu0 }
 0x305   :  { %v1964_v57 = vpop.f32.mrf.mxu2 }
 0x306   :  { %v1967_v60 = vadd.f32 %v1964_v57, %v1900_v58  ;;  %v4558_v57 = vld [vmem:[%s5536_s5 + $0xd8] sm:$0xff]   ;;  %v4557_v58 = vld [vmem:[%s5536_s5 + $0xd0] sm:$0xff]  }
 0x307   :  { %v4400_v2 = vunpack.c.h.bf16 %v4557_v58  ;;  %v4399_v5 = vunpack.c.l.bf16 %v4557_v58 }
 0x30a   :  { %v2099_v59 = vpop.f32.mrf.mxu1 }
 0x30b   :  { %3821 = vmatmul.msk.f32.vlgmr.msrb.gmra.mxu2 %vm1525_vm0, %v2099_v59  ;;  %v4384_v59 = vunpack.c.h.bf16 %v4553_v54 }
 0x30d   :  { %v2030_v61 = vpop.f32.mrf.mxu3 }
 0x30e   :  { %v2033_v62 = vadd.f32 %v2030_v61, %v1967_v60  ;;  %v4404_v60 = vunpack.c.h.bf16 %v4558_v57  ;;  %v4403_v61 = vunpack.c.l.bf16 %v4558_v57  ;;  %v4561_v57 = vld [vmem:[%s5537_s4 + $0x1b0] sm:$0xff]  }
 0x310   :  { %v2036_v63 = vmax.f32 %v2033_v62, 0.0  ;;  %v4552_v62 = vld [vmem:[%s5537_s4 + $0x168] sm:$0xff]   ;;  %2574 = vmatpush.msra.mxu0 %v4404_v60 }
 0x311   :  { %v4380_v4 = vunpack.c.h.bf16 %v4552_v62  ;;  %v4379_v8 = vunpack.c.l.bf16 %v4552_v62  ;;  %v4560_v60 = vld [vmem:[%s5537_s4 + $0x1a8] sm:$0xff]  }
 0x312   :  { %2158 = vmatpush.msrb.mxu1 %v2036_v63  ;;  %3871 = vmatmul.msk.f32.vlgmr.msrb.gmra.mxu0 %vm1525_vm0, %v2036_v63  ;;  %v4411_v62 = vunpack.c.l.bf16 %v4560_v60 }
 0x313   :  { %3822 = vmatmul.msk.f32.vlgmr.msrb.gmra.mxu1 %vm1551_vm1, %v5172_v37  ;;  %2575 = vmatpush.msra.mxu0 %v4403_v61  ;;  %v4559_v61 = vld [vmem:[%s5537_s4 + $0x1a0] sm:$0xff]  }
 0x314   :  { %2264 = vmatpush.msra.mxu1 %v5267_v46 }
 0x315   :  { %2576 = vmatpush.msra.mxu0 %v4400_v2  ;;  %v4407_v2 = vunpack.c.l.bf16 %v4559_v61 }
 0x316   :  { %2325 = vmatpush.msrb.mxu1 %v2036_v63  ;;  %v4383_v63 = vunpack.c.l.bf16 %v4553_v54 }
 0x317   :  { %2577 = vmatpush.msra.mxu0 %v4399_v5 }
 0x319   :  { %2578 = vmatpush.msra.mxu0 %v4396_v9  ;;  %v4573_v9 = vld [vmem:[%s5537_s4 + $0x190] sm:$0xff]  }
 0x31b   :  { %3842 = vmatmul.msk.f32.vlgmr.msra.gmra.mxu1 %vm1551_vm1, %v5205_v0 }
 0x31c   :  { %2431 = vmatpush.msra.mxu1 %v5267_v46  ;;  %v4537_v46 = vld [vmem:[%s5537_s4 + $0xd0] sm:$0xff]  }
 0x31d   :  { %v4320_v18 = vunpack.c.h.bf16 %v4537_v46  ;;  %v4319_v20 = vunpack.c.l.bf16 %v4537_v46  ;;  %v4395_v46 = vunpack.c.l.bf16 %v4556_v3  ;;  %v4566_v3 = vld [vmem:[%s5537_s4 + $0x1f8] sm:$0xff]  }
 0x31e   :  { %v4435_v5 = vunpack.c.l.bf16 %v4566_v3 }
 0x31f   :  { %2299 = vmatpush.msra.mxu2 %v4320_v18  ;;  %2579 = vmatpush.msra.mxu0 %v4395_v46  ;;  %v4392_v18 = vunpack.c.h.bf16 %v4555_v15  ;;  %v4563_v15 = vld [vmem:[%s5537_s4 + $0x1e0] sm:$0xff]  }
 0x321   :  { %2300 = vmatpush.msra.mxu2 %v4319_v20  ;;  %2580 = vmatpush.msra.mxu0 %v4392_v18  ;;  %v4570_v20 = vld [vmem:[%s5536_s5 + $0xf8] sm:$0xff]  }
 0x323   :  { %3852 = vmatmul.msk.f32.vlgmr.msrb.gmra.mxu1 %vm1551_vm1, %v5212_v1  ;;  %2581 = vmatpush.msra.mxu0 %v4391_v19  ;;  %v4424_v19 = vunpack.c.h.bf16 %v4563_v15 }
 0x324   :  { %2492 = vmatpush.msrb.mxu1 %v5305_v27  ;;  %v4312_v27 = vunpack.c.h.bf16 %v4535_v25 }
 0x32b   :  { %3872 = vmatmul.msk.f32.vlgmr.msra.gmra.mxu1 %vm1551_vm1, %v5243_v29  ;;  %v4536_v29 = vld [vmem:[%s5537_s4 + $0xc8] sm:$0xff]  }
 0x32c   :  { %v4316_v21 = vunpack.c.h.bf16 %v4536_v29  ;;  %v4315_v23 = vunpack.c.l.bf16 %v4536_v29  ;;  %v4452_v29 = vunpack.c.h.bf16 %v4570_v20 }
 0x32e   :  { %2301 = vmatpush.msra.mxu2 %v4316_v21  ;;  %2741 = vmatpush.msrb.mxu0 %v4452_v29  ;;  %v4569_v21 = vld [vmem:[%s5536_s5 + $0xf0] sm:$0xff]   ;;  %v4463_v29 = vunpack.c.l.bf16 %v4573_v9 }
 0x330   :  { %2302 = vmatpush.msra.mxu2 %v4315_v23  ;;  %v4447_v23 = vunpack.c.l.bf16 %v4569_v21 }
 0x332   :  { %2303 = vmatpush.msra.mxu2 %v4312_v27  ;;  %v4567_v27 = vld [vmem:[%s5536_s5 + $0xe0] sm:$0xff]  }
 0x333   :  { %3882 = vmatmul.msk.f32.vlgmr.msrb.gmra.mxu1 %vm1551_vm1, %v5254_v16  ;;  %v4542_v16 = vld [vmem:[%s5537_s4 + $0x158] sm:$0xff]  }
 0x334   :  { %v4340_v22 = vunpack.c.h.bf16 %v4542_v16  ;;  %v4339_v24 = vunpack.c.l.bf16 %v4542_v16  ;;  %2304 = vmatpush.msra.mxu2 %v4311_v30  ;;  %v4451_v16 = vunpack.c.l.bf16 %v4570_v20  ;;  %v4439_v30 = vunpack.c.l.bf16 %v4567_v27 }
 0x335   :  { %v4423_v20 = vunpack.c.l.bf16 %v4563_v15 }
 0x336   :  { %2358 = vmatpush.msra.mxu3 %v4340_v22  ;;  %2464 = vmatpush.msrb.mxu2 %v4372_v35  ;;  %v4448_v22 = vunpack.c.h.bf16 %v4569_v21  ;;  %v4578_v21 = vld [vmem:[%s5537_s4 + $0x218] sm:$0xff]  }
 0x337   :  { %2742 = vmatpush.msrb.mxu0 %v4451_v16  ;;  %v4572_v16 = vld [vmem:[%s5537_s4 + $0x188] sm:$0xff]  }
 0x338   :  { %2359 = vmatpush.msra.mxu3 %v4339_v24  ;;  %2465 = vmatpush.msrb.mxu2 %v4371_v38  ;;  %v4568_v24 = vld [vmem:[%s5536_s5 + $0xe8] sm:$0xff]  }
 0x339   :  { %2743 = vmatpush.msrb.mxu0 %v4448_v22  ;;  %v4444_v25 = vunpack.c.h.bf16 %v4568_v24  ;;  %v4443_v26 = vunpack.c.l.bf16 %v4568_v24  ;;  %v4460_v22 = vunpack.c.h.bf16 %v4572_v16  ;;  %v4459_v24 = vunpack.c.l.bf16 %v4572_v16 }
 0x33a   :  { %2360 = vmatpush.msra.mxu3 %v4336_v28  ;;  %2466 = vmatpush.msrb.mxu2 %v4368_v42  ;;  %v4440_v28 = vunpack.c.h.bf16 %v4567_v27  ;;  %v4577_v27 = vld [vmem:[%s5537_s4 + $0x210] sm:$0xff]  }
 0x33b   :  { %2744 = vmatpush.msrb.mxu0 %v4447_v23  ;;  %v4484_v23 = vunpack.c.h.bf16 %v4578_v21 }
 0x33c   :  { %2361 = vmatpush.msra.mxu3 %v4335_v31  ;;  %2467 = vmatpush.msrb.mxu2 %v4367_v44  ;;  %v4588_v31 = vld [vmem:[%s5538_s6 + $0x3] ss:$0 sm:$0xff] }
 0x33d   :  { %2745 = vmatpush.msrb.mxu0 %v4444_v25  ;;  %v4483_v25 = vunpack.c.l.bf16 %v4578_v21 }
 0x33e   :  { %2362 = vmatpush.msra.mxu3 %v4332_v34  ;;  %2468 = vmatpush.msrb.mxu2 %v4364_v47  ;;  %v2080_v34 = vadd.f32 %v4588_v31, %v2079_v32  ;;  %v4479_v32 = vunpack.c.l.bf16 %v4577_v27 }
 0x33f   :  { %2746 = vmatpush.msrb.mxu0 %v4443_v26  ;;  %v4571_v26 = vld [vmem:[%s5537_s4 + $0x180] sm:$0xff]  }
 0x340   :  { %2363 = vmatpush.msra.mxu3 %v4331_v36  ;;  %2469 = vmatpush.msrb.mxu2 %v4363_v48  ;;  %v4455_v31 = vunpack.c.l.bf16 %v4571_v26 }
 0x341   :  { %2747 = vmatpush.msrb.mxu0 %v4440_v28  ;;  %v4456_v28 = vunpack.c.h.bf16 %v4571_v26 }
 0x342   :  { %2364 = vmatpush.msra.mxu3 %v4328_v41  ;;  %2470 = vmatpush.msrb.mxu2 %v4360_v50  ;;  %v2246_v41 = vpop.f32.mrf.mxu0 }
 0x343   :  { %2748 = vmatpush.msrb.mxu0 %v4439_v30  ;;  %v4480_v30 = vunpack.c.h.bf16 %v4577_v27 }
 0x344   :  { %2365 = vmatpush.msra.mxu3 %v4327_v43  ;;  %2471 = vmatpush.msrb.mxu2 %v4359_v51  ;;  %v2247_v43 = vadd.f32 %v4589_v40, %v2246_v41  ;;  %v2877_v41 = vld [vmem:[%s5540_s7] sm:$0xff] }
 0x38e   :  { %v2139_v33 = vpop.f32.mrf.mxu2 }
 0x38f   :  { %v2142_v35 = vadd.f32 %v2139_v33, %v2080_v34  ;;  %v2413_v50 = vpop.f32.mrf.mxu0  ;;  %v4576_v33 = vld [vmem:[%s5537_s4 + $0x208] sm:$0xff]  }
 0x390   :  { %v2160_v55 = vpop.f32.mrf.mxu1  ;;  %v2414_v52 = vadd.f32 %v4590_v49, %v2413_v50  ;;  %v4476_v34 = vunpack.c.h.bf16 %v4576_v33  ;;  %v4591_v49 = vld [vmem:[%s5538_s6 + $0x6] ss:$0 sm:$0xff] }
 0x391   :  { %3831 = vmatmul.msk.f32.vlgmr.msrb.gmra.mxu3 %vm1525_vm0, %v2160_v55 }
 0x392   :  { %2525 = vmatpush.msrb.mxu3 %v4388_v53 }
 0x394   :  { %2526 = vmatpush.msrb.mxu3 %v4387_v56 }
 0x396   :  { %2527 = vmatpush.msrb.mxu3 %v4384_v59 }
 0x398   :  { %v2266_v7 = vpop.f32.mrf.mxu1  ;;  %2528 = vmatpush.msrb.mxu3 %v4383_v63  ;;  %v4408_v63 = vunpack.c.h.bf16 %v4559_v61 }
 0x399   :  { %3851 = vmatmul.msk.f32.vlgmr.msra.gmra.mxu2 %vm1525_vm0, %v2266_v7  ;;  %v4574_v7 = vld [vmem:[%s5537_s4 + $0x198] sm:$0xff]  }
 0x39a   :  { %2529 = vmatpush.msrb.mxu3 %v4380_v4  ;;  %v4436_v4 = vunpack.c.h.bf16 %v4566_v3 }
 0x39c   :  { %2530 = vmatpush.msrb.mxu3 %v4379_v8  ;;  %v4468_v8 = vunpack.c.h.bf16 %v4574_v7 }
 0x39e   :  { %2531 = vmatpush.msrb.mxu3 %v4376_v10  ;;  %v4432_v10 = vunpack.c.h.bf16 %v4565_v6 }
 0x3a0   :  { %v2327_v12 = vpop.f32.mrf.mxu1  ;;  %2532 = vmatpush.msrb.mxu3 %v4375_v11  ;;  %v4467_v11 = vunpack.c.l.bf16 %v4574_v7 }
 0x3a1   :  { %3861 = vmatmul.msk.f32.vlgmr.msra.gmra.mxu3 %vm1525_vm0, %v2327_v12  ;;  %v4564_v12 = vld [vmem:[%s5537_s4 + $0x1e8] sm:$0xff]  }
 0x3a2   :  { %2695 = vmatpush.msra.mxu3 %v4436_v4  ;;  %v4428_v46 = vunpack.c.h.bf16 %v4564_v12  ;;  %v4427_v18 = vunpack.c.l.bf16 %v4564_v12 }
 0x3a4   :  { %2696 = vmatpush.msra.mxu3 %v4435_v5 }
 0x3a6   :  { %2697 = vmatpush.msra.mxu3 %v4432_v10 }
 0x3a8   :  { %v2433_v13 = vpop.f32.mrf.mxu1 }
 0x3a9   :  { %3881 = vmatmul.msk.f32.vlgmr.msrb.gmra.mxu2 %vm1525_vm0, %v2433_v13  ;;  %v4464_v13 = vunpack.c.h.bf16 %v4573_v9 }
 0x3b0   :  { %v2494_v14 = vpop.f32.mrf.mxu1 }
 0x3b1   :  { %3891 = vmatmul.msk.f32.vlgmr.msrb.gmra.mxu3 %vm1525_vm0, %v2494_v14  ;;  %v4431_v14 = vunpack.c.l.bf16 %v4565_v6 }
 0x3b3   :  { %2698 = vmatpush.msra.mxu3 %v4431_v14 }
 0x3b5   :  { %2699 = vmatpush.msra.mxu3 %v4428_v46 }
 0x3b7   :  { %2700 = vmatpush.msra.mxu3 %v4427_v18 }
 0x3b9   :  { %2701 = vmatpush.msra.mxu3 %v4424_v19 }
 0x3bb   :  { %2702 = vmatpush.msra.mxu3 %v4423_v20 }
 0x3bd   :  { %2862 = vmatpush.msrb.mxu3 %v4484_v23 }
 0x3bf   :  { %2863 = vmatpush.msrb.mxu3 %v4483_v25 }
 0x3c1   :  { %2864 = vmatpush.msrb.mxu3 %v4480_v30 }
 0x3c3   :  { %2865 = vmatpush.msrb.mxu3 %v4479_v32 }
 0x3c5   :  { %2866 = vmatpush.msrb.mxu3 %v4476_v34 }
 0x414   :  { %v2200_v36 = vpop.f32.mrf.mxu3 }
 0x415   :  { %v2203_v38 = vadd.f32 %v2200_v36, %v2142_v35  ;;  %v4475_v35 = vunpack.c.l.bf16 %v4576_v33  ;;  %v4575_v36 = vld [vmem:[%s5537_s4 + $0x200] sm:$0xff]  }
 0x417   :  { %v2538_v39 = vmax.f32 %v2203_v38, 0.0  ;;  %v4472_v38 = vunpack.c.h.bf16 %v4575_v36  ;;  %2867 = vmatpush.msrb.mxu3 %v4475_v35 }
 0x419   :  { %3901 = vmatmul.msk.f32.vlgmr.msra.gmra.mxu0 %vm1525_vm0, %v2538_v39  ;;  %2868 = vmatpush.msrb.mxu3 %v4472_v38 }
 0x41c   :  { %v2306_v42 = vpop.f32.mrf.mxu2 }
 0x41d   :  { %v2309_v44 = vadd.f32 %v2306_v42, %v2247_v43  ;;  %v4593_v42 = vmov 0   ;;  %v3953_v43 = vld [vmem:[%s5540_s7 + $0x8] sm:$0xff] }
 0x41e   :  { %4581 = vset.pattern.permute.xlu0 %v4593_v42 }
 0x41f   :  { %2879 = vperm.xlu0 %4581, %v2877_v41  }
 0x424   :  { %v2367_v45 = vpop.f32.mrf.mxu3 }
 0x425   :  { %v2370_v47 = vadd.f32 %v2367_v45, %v2309_v44 }
 0x427   :  { %v2539_v48 = vmax.f32 %v2370_v47, 0.0  ;;  %2887 = vperm.xlu0 %4581, %v3953_v43  }
 0x429   :  { %2601 = vmatpush.msra.mxu1 %v2539_v48  ;;  %3931 = vmatmul.msk.f32.vlgmr.msrb.gmra.mxu0 %vm1525_vm0, %v2539_v48  ;;  %v2875_v48 = vlaneseq }
 0x42a   :  { %3902 = vmatmul.msk.f32.vlgmr.msra.gmra.mxu1 %vm1551_vm1, %v5159_v17  ;;  %v4562_v17 = vld [vmem:[%s5537_s4 + $0x1b8] sm:$0xff]  }
 0x42b   :  { %v4420_v58 = vunpack.c.h.bf16 %v4562_v17  ;;  %v4419_v59 = vunpack.c.l.bf16 %v4562_v17 }
 0x42c   :  { %v2473_v51 = vpop.f32.mrf.mxu2 }
 0x42d   :  { %v2476_v53 = vadd.f32 %v2473_v51, %v2414_v52  ;;  %2634 = vmatpush.msra.mxu2 %v4420_v58  ;;  %v2876_v51 = vand.u32 127, %v2875_v48 }
 0x42f   :  { %2635 = vmatpush.msra.mxu2 %v4419_v59  ;;  %v4592_v59 = vld [vmem:[%s5538_s6 + $0x7] ss:$0 sm:$0xff] }
 0x434   :  { %v2534_v54 = vpop.f32.mrf.mxu3 }
 0x435   :  { %v2537_v55 = vadd.f32 %v2534_v54, %v2476_v53 }
 0x437   :  { %v2540_v56 = vmax.f32 %v2537_v55, 0.0 }
 0x439   :  { %2662 = vmatpush.msrb.mxu1 %v2540_v56 }
 0x43a   :  { %3912 = vmatmul.msk.f32.vlgmr.msrb.gmra.mxu1 %vm1551_vm1, %v5172_v37  ;;  %v4416_v37 = vunpack.c.h.bf16 %v4561_v57 }
 0x43b   :  { %2768 = vmatpush.msra.mxu1 %v2538_v39  ;;  %v4471_v39 = vunpack.c.l.bf16 %v4575_v36 }
 0x43c   :  { %2636 = vmatpush.msra.mxu2 %v4416_v37 }
 0x43d   :  { %2829 = vmatpush.msrb.mxu1 %v2540_v56  ;;  %2869 = vmatpush.msrb.mxu3 %v4471_v39 }
 0x442   :  { %3932 = vmatmul.msk.f32.vlgmr.msra.gmra.mxu1 %vm1551_vm1, %v5205_v0  ;;  %v4415_v0 = vunpack.c.l.bf16 %v4561_v57  ;;  %v4594_v57 = vmov 0.0  }
 0x444   :  { %2637 = vmatpush.msra.mxu2 %v4415_v0 }
 0x44a   :  { %3942 = vmatmul.msk.f32.vlgmr.msrb.gmra.mxu1 %vm1551_vm1, %v5212_v1  ;;  %v4412_v1 = vunpack.c.h.bf16 %v4560_v60 }
 0x44c   :  { %2638 = vmatpush.msra.mxu2 %v4412_v1 }
 0x44e   :  { %2639 = vmatpush.msra.mxu2 %v4411_v62 }
 0x450   :  { %2640 = vmatpush.msra.mxu2 %v4408_v63 }
 0x452   :  { %2641 = vmatpush.msra.mxu2 %v4407_v2 }
 0x454   :  { %2801 = vmatpush.msrb.mxu2 %v4468_v8 }
 0x456   :  { %2802 = vmatpush.msrb.mxu2 %v4467_v11 }
 0x458   :  { %2803 = vmatpush.msrb.mxu2 %v4464_v13 }
 0x45a   :  { %2804 = vmatpush.msrb.mxu2 %v4463_v29 }
 0x45c   :  { %2805 = vmatpush.msrb.mxu2 %v4460_v22 }
 0x45e   :  { %2806 = vmatpush.msrb.mxu2 %v4459_v24 }
 0x460   :  { %2807 = vmatpush.msrb.mxu2 %v4456_v28 }
 0x462   :  { %2808 = vmatpush.msrb.mxu2 %v4455_v31 }
 0x491   :  { %v2880_v54 = vpop.permute.xlu0 %2879 }
 0x492   :  { %vm2881_vm2 = vcmp.eq.s32.totalorder %v2876_v51, %v2880_v54 }
 0x493   :  { %v3952_v58 = vsel %vm2881_vm2, 1.0, %v4594_v57 }
 0x496   :  { %v2583_v50 = vpop.f32.mrf.mxu0 }
 0x497   :  { %v2584_v53 = vadd.f32 %v4591_v49, %v2583_v50 }
 0x499   :  { %v2888_v1 = vpop.permute.xlu0 %2887 }
 0x49a   :  { %vm2889_vm3 = vcmp.eq.s32.totalorder %v2876_v51, %v2888_v1 }
 0x49b   :  { %v3954_v2 = vsel %vm2889_vm3, 1.0, %v4594_v57 }
 0x4a6   :  { %v2750_v37 = vpop.f32.mrf.mxu0 }
 0x4a7   :  { %v2603_v40 = vpop.f32.mrf.mxu1  ;;  %v2751_v0 = vadd.f32 %v4592_v59, %v2750_v37 }
 0x4a8   :  { %3911 = vmatmul.msk.f32.vlgmr.msra.gmra.mxu2 %vm1525_vm0, %v2603_v40 }
 0x4b7   :  { %v2664_v44 = vpop.f32.mrf.mxu1 }
 0x4b8   :  { %3921 = vmatmul.msk.f32.vlgmr.msra.gmra.mxu3 %vm1525_vm0, %v2664_v44 }
 0x4bf   :  { %v2770_v45 = vpop.f32.mrf.mxu1 }
 0x4c0   :  { %3941 = vmatmul.msk.f32.vlgmr.msrb.gmra.mxu2 %vm1525_vm0, %v2770_v45 }
 0x4c7   :  { %v2831_v47 = vpop.f32.mrf.mxu1 }
 0x4c8   :  { %3951 = vmatmul.msk.f32.vlgmr.msrb.gmra.mxu3 %vm1525_vm0, %v2831_v47 }
 0x52b   :  { %v2643_v52 = vpop.f32.mrf.mxu2 }
 0x52c   :  { %v2646_v55 = vadd.f32 %v2643_v52, %v2584_v53 }
 0x53b   :  { %v2704_v56 = vpop.f32.mrf.mxu3 }
 0x53c   :  { %v2707_v17 = vadd.f32 %v2704_v56, %v2646_v55 }
 0x53e   :  { %2910 = vmatpush.msra.mxu0 %v2707_v17 }
 0x53f   :  { %3955 = vmatmul.msk.f32.vlgmr.msra.gmra.mxu0 %vm1551_vm1, %v3952_v58 }
 0x543   :  { %v2810_v60 = vpop.f32.mrf.mxu2 }
 0x544   :  { %v2813_v61 = vadd.f32 %v2810_v60, %v2751_v0 }
 0x54b   :  { %v2871_v62 = vpop.f32.mrf.mxu3 }
 0x54c   :  { %v2874_v63 = vadd.f32 %v2871_v62, %v2813_v61 }
 0x54e   :  { %2933 = vmatpush.msra.mxu1 %v2874_v63 }
 0x54f   :  { %3956 = vmatmul.msk.f32.vlgmr.msra.gmra.mxu1 %vm1551_vm1, %v3954_v2 }
 0x5bc   :  { %v2912_v3 = vpop.f32.mrf.mxu0 }
 0x5cc   :  { %v2935_v4 = vpop.f32.mrf.mxu1 }
 0x5cd   :  { %v2938_v5 = vmul.f32 %v2935_v4, %v2912_v3 }
 0x5cf   :  { %v2939_v6 = vsel %vm1525_vm0, %v2938_v5, 0.0 }
 0x5d0   :  { %2940 = vadd.xlane.f32.xlu1 %v2939_v6 }
 0x643   :  { %v2941_v7 = vpop.xlane.xlu1 %2940 }
 0x644   :  { %2943 = vst.msk [vmem:[%s5541_s8] sm:$0xff] %vm2942_vm4, %v2941_v7 }

</bundles_post_ra>
